<compile_context>
chip_gen: v7x
topology: tpu7x:2x2x1
jax: 0.10.0
libtpu: 0.0.40
codegen_flags: <defaults>
</compile_context>

<pallas_src>
import jax
import jax.numpy as jnp
from jax.experimental import pallas as pl
from jax.experimental.pallas import tpu as pltpu


def _round_up(x, m):
    return (x + m - 1) // m * m


# ---------------------------------------------------------------------------
# Chip-adaptive tiling / VMEM budget
# ---------------------------------------------------------------------------
def _vmem_capacity_bytes():
    try:
        return int(pltpu.get_tpu_info().vmem_capacity_bytes)
    except Exception:
        return 64 << 20                      # conservative fallback (v7x-sized)


_VMEM_CAP = _vmem_capacity_bytes()
# v7x (64 MiB VMEM/TC): 2048-row pooled tiles; v5e/v6e (128 MiB): 4096.
_TM_CAP = 2048 if _VMEM_CAP <= (64 << 20) else 4096
# Raise the scoped-VMEM limit above the 16/32 MiB defaults; keep ~30% headroom.
_VMEM_LIMIT = int(min(_VMEM_CAP * 0.7, 96 << 20))


def _pick_tm(m_rows, cap=None):
    """Pooled rows per grid step.  Largest tile that fits the budget; when the
    whole problem fits one step and there is enough work, split into two steps
    so both TensorCores of a megacore part have work."""
    cap = _TM_CAP if cap is None else cap
    m16 = _round_up(max(m_rows, 1), 16)
    if m16 <= cap:
        if m16 >= 256:
            return _round_up((m16 + 1) // 2, 16)
        return m16
    return cap


# ---------------------------------------------------------------------------
# Kernels
# ---------------------------------------------------------------------------
def conv_relu_pool_kernel(p_ref, w_ref, b_ref, o_ref):
    """Fused conv (one patch matmul per 2x2 pool offset) + in-register max-pool
    + bias + ReLU.

    p_ref : (4, TM, K) bf16 -- im2col patches, one slab per pool offset.
    w_ref : (K, 128)   bf16 -- (kh,kw,cin)->cout weights, cout zero-padded to 128.
    b_ref : (1, 128)   f32  -- zero-padded bias.
    o_ref : (TM, 128)  bf16 -- lane-dense pooled output tile.
    """
    w = w_ref[...]
    y0 = jnp.dot(p_ref[0], w, preferred_element_type=jnp.float32)
    y1 = jnp.dot(p_ref[1], w, preferred_element_type=jnp.float32)
    y2 = jnp.dot(p_ref[2], w, preferred_element_type=jnp.float32)
    y3 = jnp.dot(p_ref[3], w, preferred_element_type=jnp.float32)
    m = jnp.maximum(jnp.maximum(y0, y1), jnp.maximum(y2, y3))
    o_ref[...] = jnp.maximum(m + b_ref[...], 0.0).astype(o_ref.dtype)


def conv3_head_kernel(p_ref, w_ref, vec_ref, fcw_ref, o_ref):
    """conv3 + ReLU + 2x2 max-pool fused with BN(eval) + fc_code + ReLU +
    dropout(eval identity) + fc_output.  All parameter padding lanes are
    exactly zero, so padded lanes stay zero through the whole epilogue.

    p_ref  : (4, TB, 288) bf16   conv3 im2col patches per pool offset
    w_ref  : (288, 128)   bf16   conv3 weight (cout zero-padded to 128)
    vec_ref: (8, 128)     f32    rows: conv3 bias, BN scale, BN shift,
                                 fc_code bias, fc_output bias, 3x zero
    fcw_ref: (256, 128)   bf16   rows 0-127 fc_code W, rows 128-255 fc_output W
    o_ref  : (TB, 128)    f32    logits (cols 10..127 are zero padding)
    """
    w = w_ref[...]
    y0 = jnp.dot(p_ref[0], w, preferred_element_type=jnp.float32)
    y1 = jnp.dot(p_ref[1], w, preferred_element_type=jnp.float32)
    y2 = jnp.dot(p_ref[2], w, preferred_element_type=jnp.float32)
    y3 = jnp.dot(p_ref[3], w, preferred_element_type=jnp.float32)
    m = jnp.maximum(jnp.maximum(y0, y1), jnp.maximum(y2, y3))

    vec = vec_ref[...]
    fcw = fcw_ref[...]
    feat = jnp.maximum(m + vec[0:1, :], 0.0)           # bias + ReLU (post-pool, equivalent)
    xb = feat * vec[1:2, :] + vec[2:3, :]              # BatchNorm2d(64), eval, folded
    h = jnp.dot(xb.astype(fcw.dtype), fcw[0:128, :],
                preferred_element_type=jnp.float32) + vec[3:4, :]
    h = jnp.maximum(h, 0.0)
    # TODO(synk): Dropout(p=0.55) and BatchNorm2d use eval/inference semantics
    # (identity dropout, running statistics); train-mode is not reproduced.
    o_ref[...] = jnp.dot(h.astype(fcw.dtype), fcw[128:256, :],
                         preferred_element_type=jnp.float32) + vec[4:5, :]


# ---------------------------------------------------------------------------
# Plain-JAX glue: im2col arranged per pooling offset (no host transpose)
# ---------------------------------------------------------------------------
def _im2col_pooled(x_nhwc, k, kdim, tm):
    """Return (4, mpad, kdim) bf16 patches -- one slab per 2x2 pool offset --
    with rows zero-padded to a multiple of tm and K padded from k*k*C to kdim."""
    x = x_nhwc.astype(jnp.bfloat16)          # cast first: halves glue HBM traffic
    B, H, W, C = x.shape
    Ho, Wo = H - k + 1, W - k + 1
    Hp, Wp = Ho // 2, Wo // 2
    M = B * Hp * Wp
    kflat = k * k * C
    mpad = _round_up(M, tm)
    groups = []
    for ph in range(2):
        for pw in range(2):
            taps = []
            for kh in range(k):
                for kw in range(k):
                    taps.append(x[:, ph + kh: ph + kh + 2 * Hp: 2,
                                     pw + kw: pw + kw + 2 * Wp: 2, :])
            p = jnp.stack(taps, axis=3).reshape(M, kflat)     # (M, k*k*C), (kh,kw,c) order
            groups.append(p)
    pat = jnp.stack(groups, axis=0)                           # (4, M, kflat)
    pat = jnp.pad(pat, ((0, 0), (0, mpad - M), (0, kdim - kflat)))
    return pat, (Hp, Wp, M, mpad, mpad // tm)


def _pad_conv_weight(w_oihw, kdim):
    cout, cin, k, _ = w_oihw.shape
    kflat = k * k * cin
    # (Cout,Cin,Kh,Kw) -> (Kh,Kw,Cin,Cout) -> (kflat, Cout), matching the
    # (kh,kw,cin) flatten order of the patches; zero-pad to (kdim, 128).
    w2d = jnp.transpose(w_oihw, (2, 3, 1, 0)).reshape(kflat, cout)
    return jnp.pad(w2d, ((0, kdim - kflat), (0, 128 - cout))).astype(jnp.bfloat16)


def _pad_vec(v, width=128):
    return jnp.pad(v, (0, width - v.shape[0])).astype(jnp.float32)


# ---------------------------------------------------------------------------
# Layer wrappers
# ---------------------------------------------------------------------------
def conv_relu_pool(x_nhwc, w_oihw, b):
    cout, cin, k, _ = w_oihw.shape
    kdim = _round_up(k * k * cin, 16)     # minimal K padding: 25->32, 144->144
    B, H, W, _ = x_nhwc.shape
    Hp, Wp = (H - k + 1) // 2, (W - k + 1) // 2
    M = B * Hp * Wp
    tm = _pick_tm(M)
    patches, (Hp, Wp, M, mpad, nt) = _im2col_pooled(x_nhwc, k, kdim, tm)
    w2d = _pad_conv_weight(w_oihw, kdim)
    b2d = _pad_vec(b).reshape(1, 128)

    out = pl.pallas_call(
        conv_relu_pool_kernel,
        out_shape=jax.ShapeDtypeStruct((mpad, 128), jnp.bfloat16),
        grid=(nt,),
        in_specs=[
            pl.BlockSpec((4, tm, kdim), lambda i: (0, i, 0)),
            pl.BlockSpec((kdim, 128), lambda i: (0, 0)),
            pl.BlockSpec((1, 128), lambda i: (0, 0)),
        ],
        out_specs=pl.BlockSpec((tm, 128), lambda i: (i, 0)),
        compiler_params=pltpu.CompilerParams(
            dimension_semantics=("parallel",),
            vmem_limit_bytes=_VMEM_LIMIT),
    )(patches, w2d, b2d)
    # Slice off lane/row padding; this fuses into the next stage's im2col slices.
    return out[:M, :cout].reshape(B, Hp, Wp, cout)


def conv3_head(x_nhwc, params):
    w_oihw, b = params["conv3_w"], params["conv3_b"]
    cout, cin, k, _ = w_oihw.shape                      # 64, 32, 3
    kdim = _round_up(k * k * cin, 16)                   # 288 (no padding needed)
    B = x_nhwc.shape[0]
    tb = _pick_tm(B)
    patches, (Hp, Wp, M, mpad, nt) = _im2col_pooled(x_nhwc, k, kdim, tb)  # M == B
    w2d = _pad_conv_weight(w_oihw, kdim)

    # BatchNorm2d(64) eval-mode folded to per-channel scale/shift.  Every padded
    # lane below is exactly zero, which keeps the epilogue's padded lanes zero.
    scale = params["bn_gamma"] / jnp.sqrt(params["bn_var"] + 1e-5)
    shift = params["bn_beta"] - params["bn_mean"] * scale
    vecs = jnp.stack([
        _pad_vec(b),                       # row 0: conv3 bias
        _pad_vec(scale),                   # row 1: BN scale
        _pad_vec(shift),                   # row 2: BN shift
        _pad_vec(params["fc1_b"]),         # row 3: fc_code bias
        _pad_vec(params["fc2_b"]),         # row 4: fc_output bias
        jnp.zeros((128,), jnp.float32),
        jnp.zeros((128,), jnp.float32),
        jnp.zeros((128,), jnp.float32),
    ], axis=0)                              # (8, 128) f32 -- one operand
    fcw = jnp.concatenate([
        jnp.pad(params["fc1_w"], ((0, 64), (0, 64))),
        jnp.pad(params["fc2_w"], ((0, 64), (0, 118))),
    ], axis=0).astype(jnp.bfloat16)         # (256, 128) -- one operand

    out = pl.pallas_call(
        conv3_head_kernel,
        out_shape=jax.ShapeDtypeStruct((mpad, 128), jnp.float32),
        grid=(nt,),
        in_specs=[
            pl.BlockSpec((4, tb, kdim), lambda i: (0, i, 0)),
            pl.BlockSpec((kdim, 128), lambda i: (0, 0)),
            pl.BlockSpec((8, 128), lambda i: (0, 0)),
            pl.BlockSpec((256, 128), lambda i: (0, 0)),
        ],
        out_specs=pl.BlockSpec((tb, 128), lambda i: (i, 0)),
        compiler_params=pltpu.CompilerParams(
            dimension_semantics=("parallel",),
            vmem_limit_bytes=_VMEM_LIMIT),
    )(patches, w2d, vecs, fcw)
    return out[:B, :10]


# ---------------------------------------------------------------------------
# Full forward pass (mirrors Network.forward, eval mode)
# ---------------------------------------------------------------------------
def network_forward(x_nchw, params):
    x = jnp.transpose(x_nchw, (0, 2, 3, 1)).astype(jnp.float32)    # NCHW -> NHWC
    x = conv_relu_pool(x, params["conv1_w"], params["conv1_b"])    # (B,12,12,16)
    x = conv_relu_pool(x, params["conv2_w"], params["conv2_b"])    # (B, 5, 5,32)
    return conv3_head(x, params)                                   # (B, 10) f32


# ---------------------------------------------------------------------------
# Deterministic parameter init (PyTorch-style uniform(+-1/sqrt(fan_in)))
# ---------------------------------------------------------------------------
def init_params(key):
    def u(k, shape, fan_in):
        bound = 1.0 / jnp.sqrt(jnp.float32(fan_in))
        return jax.random.uniform(k, shape, jnp.float32, -bound, bound)

    ks = jax.random.split(key, 10)
    p = {}
    p["conv1_w"] = u(ks[0], (16, 1, 5, 5), 1 * 5 * 5)
    p["conv1_b"] = u(ks[1], (16,), 1 * 5 * 5)
    p["conv2_w"] = u(ks[2], (32, 16, 3, 3), 16 * 3 * 3)
    p["conv2_b"] = u(ks[3], (32,), 16 * 3 * 3)
    p["conv3_w"] = u(ks[4], (64, 32, 3, 3), 32 * 3 * 3)
    p["conv3_b"] = u(ks[5], (64,), 32 * 3 * 3)
    p["fc1_w"] = u(ks[6], (64, 64), 64)   # stored as (in, out) = torch W.T
    p["fc1_b"] = u(ks[7], (64,), 64)
    p["fc2_w"] = u(ks[8], (64, 10), 64)   # stored as (in, out) = torch W.T
    p["fc2_b"] = u(ks[9], (10,), 64)
    # BatchNorm2d(64) default parameters / buffers
    p["bn_gamma"] = jnp.ones((64,), jnp.float32)
    p["bn_beta"] = jnp.zeros((64,), jnp.float32)
    p["bn_mean"] = jnp.zeros((64,), jnp.float32)
    p["bn_var"] = jnp.ones((64,), jnp.float32)
    return p


if __name__ == "__main__":
    key = jax.random.PRNGKey(0)
    pkey, xkey = jax.random.split(key)
    params = init_params(pkey)
    # MNIST-shaped input implied by the module (final 1x1x64 feeds Linear(64)).
    x = jax.random.normal(xkey, (2, 1, 28, 28), jnp.float32)
    out = jax.jit(network_forward)(x, params)
    out = jax.block_until_ready(out)
    assert out.shape == (2, 10) and out.dtype == jnp.float32
    assert bool(jnp.all(jnp.isfinite(out)))
    print("KERNEL_OK")
</pallas_src>

<mosaic_0001>
module attributes {stable_mosaic.version = 11 : i64} {
  func.func @conv_relu_pool_kernel(%arg0: i32, %arg1: memref<4x144x32xbf16, #tpu.memory_space<vmem>>, %arg2: memref<32x128xbf16, #tpu.memory_space<vmem>>, %arg3: memref<1x128xf32, #tpu.memory_space<vmem>>, %arg4: memref<144x128xbf16, #tpu.memory_space<vmem>>) attributes {dimension_semantics = [#tpu.dimension_semantics<parallel>], iteration_bounds = array<i64: 2>, scalar_prefetch = 0 : i64, scratch_operands = 0 : i64, tpu.core_type = #tpu.core_type<tc>, window_params = [{transform_indices = @transform_0, window_bounds = array<i64: 4, 144, 32>}, {pipeline_mode = #tpu.pipeline_mode<synchronous>, transform_indices = @transform_1, window_bounds = array<i64: 32, 128>}, {pipeline_mode = #tpu.pipeline_mode<synchronous>, transform_indices = @transform_2, window_bounds = array<i64: 1, 128>}, {transform_indices = @transform_3, window_bounds = array<i64: 144, 128>}]} {
    %c0 = arith.constant 0 : index
    %c0_0 = arith.constant 0 : index
    %0 = vector.load %arg2[%c0, %c0_0] : memref<32x128xbf16, #tpu.memory_space<vmem>>, vector<32x128xbf16>
    %c0_1 = arith.constant 0 : index
    %c0_2 = arith.constant 0 : index
    %c0_3 = arith.constant 0 : index
    %1 = vector.load %arg1[%c0_1, %c0_2, %c0_3] : memref<4x144x32xbf16, #tpu.memory_space<vmem>>, vector<1x144x32xbf16>
    %2 = vector.shape_cast %1 : vector<1x144x32xbf16> to vector<144x32xbf16>
    %cst = arith.constant dense<0.000000e+00> : vector<144x128xf32>
    %3 = tpu.matmul %2, %0, %cst {dimension_numbers = #tpu.dot_dimension_numbers<[1], [0], [0], [1], [0, 0, 1, 1], [], []>} : vector<144x32xbf16>, vector<32x128xbf16>, vector<144x128xf32> -> vector<144x128xf32>
    %c1 = arith.constant 1 : index
    %c0_4 = arith.constant 0 : index
    %c0_5 = arith.constant 0 : index
    %4 = vector.load %arg1[%c1, %c0_4, %c0_5] : memref<4x144x32xbf16, #tpu.memory_space<vmem>>, vector<1x144x32xbf16>
    %5 = vector.shape_cast %4 : vector<1x144x32xbf16> to vector<144x32xbf16>
    %cst_6 = arith.constant dense<0.000000e+00> : vector<144x128xf32>
    %6 = tpu.matmul %5, %0, %cst_6 {dimension_numbers = #tpu.dot_dimension_numbers<[1], [0], [0], [1], [0, 0, 1, 1], [], []>} : vector<144x32xbf16>, vector<32x128xbf16>, vector<144x128xf32> -> vector<144x128xf32>
    %c2 = arith.constant 2 : index
    %c0_7 = arith.constant 0 : index
    %c0_8 = arith.constant 0 : index
    %7 = vector.load %arg1[%c2, %c0_7, %c0_8] : memref<4x144x32xbf16, #tpu.memory_space<vmem>>, vector<1x144x32xbf16>
    %8 = vector.shape_cast %7 : vector<1x144x32xbf16> to vector<144x32xbf16>
    %cst_9 = arith.constant dense<0.000000e+00> : vector<144x128xf32>
    %9 = tpu.matmul %8, %0, %cst_9 {dimension_numbers = #tpu.dot_dimension_numbers<[1], [0], [0], [1], [0, 0, 1, 1], [], []>} : vector<144x32xbf16>, vector<32x128xbf16>, vector<144x128xf32> -> vector<144x128xf32>
    %c3 = arith.constant 3 : index
    %c0_10 = arith.constant 0 : index
    %c0_11 = arith.constant 0 : index
    %10 = vector.load %arg1[%c3, %c0_10, %c0_11] : memref<4x144x32xbf16, #tpu.memory_space<vmem>>, vector<1x144x32xbf16>
    %11 = vector.shape_cast %10 : vector<1x144x32xbf16> to vector<144x32xbf16>
    %cst_12 = arith.constant dense<0.000000e+00> : vector<144x128xf32>
    %12 = tpu.matmul %11, %0, %cst_12 {dimension_numbers = #tpu.dot_dimension_numbers<[1], [0], [0], [1], [0, 0, 1, 1], [], []>} : vector<144x32xbf16>, vector<32x128xbf16>, vector<144x128xf32> -> vector<144x128xf32>
    %13 = arith.maximumf %3, %6 : vector<144x128xf32>
    %14 = arith.maximumf %9, %12 : vector<144x128xf32>
    %15 = arith.maximumf %13, %14 : vector<144x128xf32>
    %c0_13 = arith.constant 0 : index
    %c0_14 = arith.constant 0 : index
    %16 = vector.load %arg3[%c0_13, %c0_14] : memref<1x128xf32, #tpu.memory_space<vmem>>, vector<1x128xf32>
    %17 = vector.broadcast %16 : vector<1x128xf32> to vector<144x128xf32>
    %18 = arith.addf %15, %17 : vector<144x128xf32>
    %cst_15 = arith.constant 0.000000e+00 : f32
    %19 = vector.broadcast %cst_15 : f32 to vector<144x128xf32>
    %20 = arith.maximumf %18, %19 : vector<144x128xf32>
    %21 = arith.truncf %20 : vector<144x128xf32> to vector<144x128xbf16>
    %c0_16 = arith.constant 0 : index
    %c0_17 = arith.constant 0 : index
    %22 = vector.load %arg4[%c0_16, %c0_17] : memref<144x128xbf16, #tpu.memory_space<vmem>>, vector<144x128xbf16>
    tpu.vector_store %arg4[%c0_16, %c0_17], %21 {strides = array<i32>} : memref<144x128xbf16, #tpu.memory_space<vmem>>, vector<144x128xbf16>,
    return
  }
  func.func @transform_0(%arg0: i32) -> (i32, i32, i32) {
    %c0_i32 = arith.constant 0 : i32
    %c0_i32_0 = arith.constant 0 : i32
    %c0_i32_1 = arith.constant 0 : i32
    return %c0_i32, %arg0, %c0_i32_0 : i32, i32, i32
  }
  func.func @transform_1(%arg0: i32) -> (i32, i32) {
    %c0_i32 = arith.constant 0 : i32
    %c0_i32_0 = arith.constant 0 : i32
    %c0_i32_1 = arith.constant 0 : i32
    return %c0_i32, %c0_i32_0 : i32, i32
  }
  func.func @transform_2(%arg0: i32) -> (i32, i32) {
    %c0_i32 = arith.constant 0 : i32
    %c0_i32_0 = arith.constant 0 : i32
    %c0_i32_1 = arith.constant 0 : i32
    return %c0_i32, %c0_i32_0 : i32, i32
  }
  func.func @transform_3(%arg0: i32) -> (i32, i32) {
    %c0_i32 = arith.constant 0 : i32
    %c0_i32_0 = arith.constant 0 : i32
    return %arg0, %c0_i32 : i32, i32
  }
}

module attributes {stable_mosaic.version = 11 : i64} {
  func.func @conv_relu_pool_kernel(%arg0: i32, %arg1: memref<4x64x144xbf16, #tpu.memory_space<vmem>>, %arg2: memref<144x128xbf16, #tpu.memory_space<vmem>>, %arg3: memref<1x128xf32, #tpu.memory_space<vmem>>, %arg4: memref<64x128xbf16, #tpu.memory_space<vmem>>) attributes {dimension_semantics = [#tpu.dimension_semantics<parallel>], iteration_bounds = array<i64: 1>, scalar_prefetch = 0 : i64, scratch_operands = 0 : i64, tpu.core_type = #tpu.core_type<tc>, window_params = [{transform_indices = @transform_0, window_bounds = array<i64: 4, 64, 144>}, {pipeline_mode = #tpu.pipeline_mode<synchronous>, transform_indices = @transform_1, window_bounds = array<i64: 144, 128>}, {pipeline_mode = #tpu.pipeline_mode<synchronous>, transform_indices = @transform_2, window_bounds = array<i64: 1, 128>}, {transform_indices = @transform_3, window_bounds = array<i64: 64, 128>}]} {
    %c0 = arith.constant 0 : index
    %c0_0 = arith.constant 0 : index
    %0 = vector.load %arg2[%c0, %c0_0] : memref<144x128xbf16, #tpu.memory_space<vmem>>, vector<144x128xbf16>
    %c0_1 = arith.constant 0 : index
    %c0_2 = arith.constant 0 : index
    %c0_3 = arith.constant 0 : index
    %1 = vector.load %arg1[%c0_1, %c0_2, %c0_3] : memref<4x64x144xbf16, #tpu.memory_space<vmem>>, vector<1x64x144xbf16>
    %2 = vector.shape_cast %1 : vector<1x64x144xbf16> to vector<64x144xbf16>
    %cst = arith.constant dense<0.000000e+00> : vector<64x128xf32>
    %3 = tpu.matmul %2, %0, %cst {dimension_numbers = #tpu.dot_dimension_numbers<[1], [0], [0], [1], [0, 0, 1, 1], [], []>} : vector<64x144xbf16>, vector<144x128xbf16>, vector<64x128xf32> -> vector<64x128xf32>
    %c1 = arith.constant 1 : index
    %c0_4 = arith.constant 0 : index
    %c0_5 = arith.constant 0 : index
    %4 = vector.load %arg1[%c1, %c0_4, %c0_5] : memref<4x64x144xbf16, #tpu.memory_space<vmem>>, vector<1x64x144xbf16>
    %5 = vector.shape_cast %4 : vector<1x64x144xbf16> to vector<64x144xbf16>
    %cst_6 = arith.constant dense<0.000000e+00> : vector<64x128xf32>
    %6 = tpu.matmul %5, %0, %cst_6 {dimension_numbers = #tpu.dot_dimension_numbers<[1], [0], [0], [1], [0, 0, 1, 1], [], []>} : vector<64x144xbf16>, vector<144x128xbf16>, vector<64x128xf32> -> vector<64x128xf32>
    %c2 = arith.constant 2 : index
    %c0_7 = arith.constant 0 : index
    %c0_8 = arith.constant 0 : index
    %7 = vector.load %arg1[%c2, %c0_7, %c0_8] : memref<4x64x144xbf16, #tpu.memory_space<vmem>>, vector<1x64x144xbf16>
    %8 = vector.shape_cast %7 : vector<1x64x144xbf16> to vector<64x144xbf16>
    %cst_9 = arith.constant dense<0.000000e+00> : vector<64x128xf32>
    %9 = tpu.matmul %8, %0, %cst_9 {dimension_numbers = #tpu.dot_dimension_numbers<[1], [0], [0], [1], [0, 0, 1, 1], [], []>} : vector<64x144xbf16>, vector<144x128xbf16>, vector<64x128xf32> -> vector<64x128xf32>
    %c3 = arith.constant 3 : index
    %c0_10 = arith.constant 0 : index
    %c0_11 = arith.constant 0 : index
    %10 = vector.load %arg1[%c3, %c0_10, %c0_11] : memref<4x64x144xbf16, #tpu.memory_space<vmem>>, vector<1x64x144xbf16>
    %11 = vector.shape_cast %10 : vector<1x64x144xbf16> to vector<64x144xbf16>
    %cst_12 = arith.constant dense<0.000000e+00> : vector<64x128xf32>
    %12 = tpu.matmul %11, %0, %cst_12 {dimension_numbers = #tpu.dot_dimension_numbers<[1], [0], [0], [1], [0, 0, 1, 1], [], []>} : vector<64x144xbf16>, vector<144x128xbf16>, vector<64x128xf32> -> vector<64x128xf32>
    %13 = arith.maximumf %3, %6 : vector<64x128xf32>
    %14 = arith.maximumf %9, %12 : vector<64x128xf32>
    %15 = arith.maximumf %13, %14 : vector<64x128xf32>
    %c0_13 = arith.constant 0 : index
    %c0_14 = arith.constant 0 : index
    %16 = vector.load %arg3[%c0_13, %c0_14] : memref<1x128xf32, #tpu.memory_space<vmem>>, vector<1x128xf32>
    %17 = vector.broadcast %16 : vector<1x128xf32> to vector<64x128xf32>
    %18 = arith.addf %15, %17 : vector<64x128xf32>
    %cst_15 = arith.constant 0.000000e+00 : f32
    %19 = vector.broadcast %cst_15 : f32 to vector<64x128xf32>
    %20 = arith.maximumf %18, %19 : vector<64x128xf32>
    %21 = arith.truncf %20 : vector<64x128xf32> to vector<64x128xbf16>
    %c0_16 = arith.constant 0 : index
    %c0_17 = arith.constant 0 : index
    %22 = vector.load %arg4[%c0_16, %c0_17] : memref<64x128xbf16, #tpu.memory_space<vmem>>, vector<64x128xbf16>
    tpu.vector_store %arg4[%c0_16, %c0_17], %21 {strides = array<i32>} : memref<64x128xbf16, #tpu.memory_space<vmem>>, vector<64x128xbf16>,
    return
  }
  func.func @transform_0(%arg0: i32) -> (i32, i32, i32) {
    %c0_i32 = arith.constant 0 : i32
    %c0_i32_0 = arith.constant 0 : i32
    %c0_i32_1 = arith.constant 0 : i32
    return %c0_i32, %arg0, %c0_i32_0 : i32, i32, i32
  }
  func.func @transform_1(%arg0: i32) -> (i32, i32) {
    %c0_i32 = arith.constant 0 : i32
    %c0_i32_0 = arith.constant 0 : i32
    %c0_i32_1 = arith.constant 0 : i32
    return %c0_i32, %c0_i32_0 : i32, i32
  }
  func.func @transform_2(%arg0: i32) -> (i32, i32) {
    %c0_i32 = arith.constant 0 : i32
    %c0_i32_0 = arith.constant 0 : i32
    %c0_i32_1 = arith.constant 0 : i32
    return %c0_i32, %c0_i32_0 : i32, i32
  }
  func.func @transform_3(%arg0: i32) -> (i32, i32) {
    %c0_i32 = arith.constant 0 : i32
    %c0_i32_0 = arith.constant 0 : i32
    return %arg0, %c0_i32 : i32, i32
  }
}

module attributes {stable_mosaic.version = 11 : i64} {
  func.func @conv3_head_kernel(%arg0: i32, %arg1: memref<4x16x288xbf16, #tpu.memory_space<vmem>>, %arg2: memref<288x128xbf16, #tpu.memory_space<vmem>>, %arg3: memref<8x128xf32, #tpu.memory_space<vmem>>, %arg4: memref<256x128xbf16, #tpu.memory_space<vmem>>, %arg5: memref<16x128xf32, #tpu.memory_space<vmem>>) attributes {dimension_semantics = [#tpu.dimension_semantics<parallel>], iteration_bounds = array<i64: 1>, scalar_prefetch = 0 : i64, scratch_operands = 0 : i64, tpu.core_type = #tpu.core_type<tc>, window_params = [{transform_indices = @transform_0, window_bounds = array<i64: 4, 16, 288>}, {pipeline_mode = #tpu.pipeline_mode<synchronous>, transform_indices = @transform_1, window_bounds = array<i64: 288, 128>}, {pipeline_mode = #tpu.pipeline_mode<synchronous>, transform_indices = @transform_2, window_bounds = array<i64: 8, 128>}, {pipeline_mode = #tpu.pipeline_mode<synchronous>, transform_indices = @transform_3, window_bounds = array<i64: 256, 128>}, {transform_indices = @transform_4, window_bounds = array<i64: 16, 128>}]} {
    %c0 = arith.constant 0 : index
    %c0_0 = arith.constant 0 : index
    %0 = vector.load %arg2[%c0, %c0_0] : memref<288x128xbf16, #tpu.memory_space<vmem>>, vector<288x128xbf16>
    %c0_1 = arith.constant 0 : index
    %c0_2 = arith.constant 0 : index
    %c0_3 = arith.constant 0 : index
    %1 = vector.load %arg1[%c0_1, %c0_2, %c0_3] : memref<4x16x288xbf16, #tpu.memory_space<vmem>>, vector<1x16x288xbf16>
    %2 = vector.shape_cast %1 : vector<1x16x288xbf16> to vector<16x288xbf16>
    %cst = arith.constant dense<0.000000e+00> : vector<16x128xf32>
    %3 = tpu.matmul %2, %0, %cst {dimension_numbers = #tpu.dot_dimension_numbers<[1], [0], [0], [1], [0, 0, 1, 1], [], []>} : vector<16x288xbf16>, vector<288x128xbf16>, vector<16x128xf32> -> vector<16x128xf32>
    %c1 = arith.constant 1 : index
    %c0_4 = arith.constant 0 : index
    %c0_5 = arith.constant 0 : index
    %4 = vector.load %arg1[%c1, %c0_4, %c0_5] : memref<4x16x288xbf16, #tpu.memory_space<vmem>>, vector<1x16x288xbf16>
    %5 = vector.shape_cast %4 : vector<1x16x288xbf16> to vector<16x288xbf16>
    %cst_6 = arith.constant dense<0.000000e+00> : vector<16x128xf32>
    %6 = tpu.matmul %5, %0, %cst_6 {dimension_numbers = #tpu.dot_dimension_numbers<[1], [0], [0], [1], [0, 0, 1, 1], [], []>} : vector<16x288xbf16>, vector<288x128xbf16>, vector<16x128xf32> -> vector<16x128xf32>
    %c2 = arith.constant 2 : index
    %c0_7 = arith.constant 0 : index
    %c0_8 = arith.constant 0 : index
    %7 = vector.load %arg1[%c2, %c0_7, %c0_8] : memref<4x16x288xbf16, #tpu.memory_space<vmem>>, vector<1x16x288xbf16>
    %8 = vector.shape_cast %7 : vector<1x16x288xbf16> to vector<16x288xbf16>
    %cst_9 = arith.constant dense<0.000000e+00> : vector<16x128xf32>
    %9 = tpu.matmul %8, %0, %cst_9 {dimension_numbers = #tpu.dot_dimension_numbers<[1], [0], [0], [1], [0, 0, 1, 1], [], []>} : vector<16x288xbf16>, vector<288x128xbf16>, vector<16x128xf32> -> vector<16x128xf32>
    %c3 = arith.constant 3 : index
    %c0_10 = arith.constant 0 : index
    %c0_11 = arith.constant 0 : index
    %10 = vector.load %arg1[%c3, %c0_10, %c0_11] : memref<4x16x288xbf16, #tpu.memory_space<vmem>>, vector<1x16x288xbf16>
    %11 = vector.shape_cast %10 : vector<1x16x288xbf16> to vector<16x288xbf16>
    %cst_12 = arith.constant dense<0.000000e+00> : vector<16x128xf32>
    %12 = tpu.matmul %11, %0, %cst_12 {dimension_numbers = #tpu.dot_dimension_numbers<[1], [0], [0], [1], [0, 0, 1, 1], [], []>} : vector<16x288xbf16>, vector<288x128xbf16>, vector<16x128xf32> -> vector<16x128xf32>
    %13 = arith.maximumf %3, %6 : vector<16x128xf32>
    %14 = arith.maximumf %9, %12 : vector<16x128xf32>
    %15 = arith.maximumf %13, %14 : vector<16x128xf32>
    %c0_13 = arith.constant 0 : index
    %c0_14 = arith.constant 0 : index
    %16 = vector.load %arg3[%c0_13, %c0_14] : memref<8x128xf32, #tpu.memory_space<vmem>>, vector<8x128xf32>
    %c0_15 = arith.constant 0 : index
    %c0_16 = arith.constant 0 : index
    %17 = vector.load %arg4[%c0_15, %c0_16] : memref<256x128xbf16, #tpu.memory_space<vmem>>, vector<256x128xbf16>
    %18 = vector.extract_strided_slice %16 {offsets = [0, 0], sizes = [1, 128], strides = [1, 1]} : vector<8x128xf32> to vector<1x128xf32>
    %19 = vector.broadcast %18 : vector<1x128xf32> to vector<16x128xf32>
    %20 = arith.addf %15, %19 : vector<16x128xf32>
    %cst_17 = arith.constant 0.000000e+00 : f32
    %21 = vector.broadcast %cst_17 : f32 to vector<16x128xf32>
    %22 = arith.maximumf %20, %21 : vector<16x128xf32>
    %23 = vector.extract_strided_slice %16 {offsets = [1, 0], sizes = [1, 128], strides = [1, 1]} : vector<8x128xf32> to vector<1x128xf32>
    %24 = vector.broadcast %23 : vector<1x128xf32> to vector<16x128xf32>
    %25 = arith.mulf %22, %24 : vector<16x128xf32>
    %26 = vector.extract_strided_slice %16 {offsets = [2, 0], sizes = [1, 128], strides = [1, 1]} : vector<8x128xf32> to vector<1x128xf32>
    %27 = vector.broadcast %26 : vector<1x128xf32> to vector<16x128xf32>
    %28 = arith.addf %25, %27 : vector<16x128xf32>
    %29 = arith.truncf %28 : vector<16x128xf32> to vector<16x128xbf16>
    %30 = vector.extract_strided_slice %17 {offsets = [0, 0], sizes = [128, 128], strides = [1, 1]} : vector<256x128xbf16> to vector<128x128xbf16>
    %cst_18 = arith.constant dense<0.000000e+00> : vector<16x128xf32>
    %31 = tpu.matmul %29, %30, %cst_18 {dimension_numbers = #tpu.dot_dimension_numbers<[1], [0], [0], [1], [0, 0, 1, 1], [], []>} : vector<16x128xbf16>, vector<128x128xbf16>, vector<16x128xf32> -> vector<16x128xf32>
    %32 = vector.extract_strided_slice %16 {offsets = [3, 0], sizes = [1, 128], strides = [1, 1]} : vector<8x128xf32> to vector<1x128xf32>
    %33 = vector.broadcast %32 : vector<1x128xf32> to vector<16x128xf32>
    %34 = arith.addf %31, %33 : vector<16x128xf32>
    %cst_19 = arith.constant 0.000000e+00 : f32
    %35 = vector.broadcast %cst_19 : f32 to vector<16x128xf32>
    %36 = arith.maximumf %34, %35 : vector<16x128xf32>
    %37 = arith.truncf %36 : vector<16x128xf32> to vector<16x128xbf16>
    %38 = vector.extract_strided_slice %17 {offsets = [128, 0], sizes = [128, 128], strides = [1, 1]} : vector<256x128xbf16> to vector<128x128xbf16>
    %cst_20 = arith.constant dense<0.000000e+00> : vector<16x128xf32>
    %39 = tpu.matmul %37, %38, %cst_20 {dimension_numbers = #tpu.dot_dimension_numbers<[1], [0], [0], [1], [0, 0, 1, 1], [], []>} : vector<16x128xbf16>, vector<128x128xbf16>, vector<16x128xf32> -> vector<16x128xf32>
    %40 = vector.extract_strided_slice %16 {offsets = [4, 0], sizes = [1, 128], strides = [1, 1]} : vector<8x128xf32> to vector<1x128xf32>
    %41 = vector.broadcast %40 : vector<1x128xf32> to vector<16x128xf32>
    %42 = arith.addf %39, %41 : vector<16x128xf32>
    %c0_21 = arith.constant 0 : index
    %c0_22 = arith.constant 0 : index
    %43 = vector.load %arg5[%c0_21, %c0_22] : memref<16x128xf32, #tpu.memory_space<vmem>>, vector<16x128xf32>
    tpu.vector_store %arg5[%c0_21, %c0_22], %42 {strides = array<i32>} : memref<16x128xf32, #tpu.memory_space<vmem>>, vector<16x128xf32>,
    return
  }
  func.func @transform_0(%arg0: i32) -> (i32, i32, i32) {
    %c0_i32 = arith.constant 0 : i32
    %c0_i32_0 = arith.constant 0 : i32
    %c0_i32_1 = arith.constant 0 : i32
    return %c0_i32, %arg0, %c0_i32_0 : i32, i32, i32
  }
  func.func @transform_1(%arg0: i32) -> (i32, i32) {
    %c0_i32 = arith.constant 0 : i32
    %c0_i32_0 = arith.constant 0 : i32
    %c0_i32_1 = arith.constant 0 : i32
    return %c0_i32, %c0_i32_0 : i32, i32
  }
  func.func @transform_2(%arg0: i32) -> (i32, i32) {
    %c0_i32 = arith.constant 0 : i32
    %c0_i32_0 = arith.constant 0 : i32
    %c0_i32_1 = arith.constant 0 : i32
    return %c0_i32, %c0_i32_0 : i32, i32
  }
  func.func @transform_3(%arg0: i32) -> (i32, i32) {
    %c0_i32 = arith.constant 0 : i32
    %c0_i32_0 = arith.constant 0 : i32
    %c0_i32_1 = arith.constant 0 : i32
    return %c0_i32, %c0_i32_0 : i32, i32
  }
  func.func @transform_4(%arg0: i32) -> (i32, i32) {
    %c0_i32 = arith.constant 0 : i32
    %c0_i32_0 = arith.constant 0 : i32
    return %arg0, %c0_i32 : i32, i32
  }
}

</mosaic_0001>

<bundles_post_ra>
// kernel: network_forward.3
= control target key start
LH: loop header
LB: loop body
LE: loop exit
PB: predicated region body
PF: predicated region fallthrough
CT: control target
= control target key end

     0   :  { %s2093_s12 = smov 0   ;;  %s2095_s13 = smov 0   ;;  %s2577_s0 = inlined_call_operand.vmem [shape: bf16[4,288,32], index: 0, kind: input, shape index: {}]   ;;  %s2578_s1 = inlined_call_operand.vmem [shape: bf16[32,128], index: 1, kind: input, shape index: {}]   ;;  %s2579_s2 = inlined_call_operand.vmem [shape: f32[1,128], index: 2, kind: input, shape index: {}]   ;;  %s2580_s3 = inlined_call_operand.vmem [shape: bf16[288,128], index: 3, kind: output, shape index: {}]  }
   0x1   :  { %s2097_s14 = smov 0  }
   0x2 LB: > { %s1549_s15 = sadd.s32 4294967295, %s2069_s14   ;;  %s2110_s16 = sadd.s32 1, %s2069_s14   ;;  %s2069_s14 = sphi %s2097_s14, %s2589_s14   ;;  %s2065_s13 = sphi %s2095_s13, %s2588_s13   ;;  %s2061_s12 = sphi %s2093_s12, %s2587_s12  }
   0x3   : > { %s17_s17 = ssub.s32 %s2069_s14, %s2110_s16  ;;  %s20_s18 = sadd.s32 1, %s2065_s13 }
   0x4   : > { %p18_p0 = scmp.eq.s32.totalorder %s17_s17, 0  ;;  %p27_p1 = scmp.ne.s32.totalorder %s2065_s13, %s2061_s12 }
   0x5   : > { %p28_p2 = scmp.eq.s32.totalorder %s2069_s14, 0  ;;  %p1552_p4 = scmp.ge.s32.totalorder %s2069_s14, 2 }
   0x6   : > { %s2119_s19 = scalar_select %p18_p0, %s2065_s13, %s20_s18  }
   0x7   : > { %p29_p3 = por %p28_p2, %p27_p1  ;;  %127 = sbr.rel (%p1552_p4) target bundleno = 37 (0x25), region = 24 }
   0xe   : > { %130 = sbr.rel (!%p29_p3) target bundleno = 37 (0x25), region = 28  ;;  %s132_s20 = sand.u32 (%p29_p3), 1, %s2065_s13  }
   0xf   : > { %s1705_s21 = smul.u32 (%p29_p3), 72, %s2069_s14 }
  0x10   : > { %s1981_s22 = smul.u32 (%p29_p3), 288, %s132_s20 }
  0x11   : > { %s2127_s25 = scalar_lea.vmem (%p29_p3), %s2577_s0, %s1705_s21 }
  0x12   : > { %v153_v0 = vld [vmem:[%s2127_s25] sm:$0xff] (%p29_p3)   ;;  %v157_v1 = vld [vmem:[%s2127_s25 + $0x8] sm:$0xff] (%p29_p3)   ;;  %v161_v2 = vld [vmem:[%s2127_s25 + $0x10] sm:$0xff] (%p29_p3)   ;;  %s2132_s26 = scalar_lea.vmem (%p29_p3), [#allocation2], %s1981_s22 }
  0x13   : > { %154 = vst [vmem:[%s2132_s26] sm:$0xff] (%p29_p3), %v153_v0   ;;  %158 = vst [vmem:[%s2132_s26 + $0x8] sm:$0xff] (%p29_p3), %v157_v1   ;;  %v165_v3 = vld [vmem:[%s2127_s25 + $0x18] sm:$0xff] (%p29_p3)   ;;  %v169_v4 = vld [vmem:[%s2127_s25 + $0x20] sm:$0xff] (%p29_p3)  }
  0x14   : > { %162 = vst [vmem:[%s2132_s26 + $0x10] sm:$0xff] (%p29_p3), %v161_v2   ;;  %v173_v5 = vld [vmem:[%s2127_s25 + $0x28] sm:$0xff] (%p29_p3)   ;;  %166 = vst [vmem:[%s2132_s26 + $0x18] sm:$0xff] (%p29_p3), %v165_v3   ;;  %v177_v6 = vld [vmem:[%s2127_s25 + $0x30] sm:$0xff] (%p29_p3)  }
  0x15   : > { %170 = vst [vmem:[%s2132_s26 + $0x20] sm:$0xff] %v169_v4   ;;  %174 = vst [vmem:[%s2132_s26 + $0x28] sm:$0xff] %v173_v5   ;;  %v181_v7 = vld [vmem:[%s2127_s25 + $0x38] sm:$0xff]   ;;  %v185_v8 = vld [vmem:[%s2127_s25 + $0x40] sm:$0xff]  }
  0x16   : > { %178 = vst [vmem:[%s2132_s26 + $0x30] sm:$0xff] %v177_v6   ;;  %182 = vst [vmem:[%s2132_s26 + $0x38] sm:$0xff] %v181_v7   ;;  %v189_v9 = vld [vmem:[%s2127_s25 + $0x90] sm:$0xff]   ;;  %v193_v10 = vld [vmem:[%s2127_s25 + $0x98] sm:$0xff]  }
  0x17   : > { %186 = vst [vmem:[%s2132_s26 + $0x40] sm:$0xff] %v185_v8   ;;  %v197_v11 = vld [vmem:[%s2127_s25 + $0xa0] sm:$0xff]   ;;  %190 = vst [vmem:[%s2132_s26 + $0x48] sm:$0xff] %v189_v9   ;;  %v201_v12 = vld [vmem:[%s2127_s25 + $0xa8] sm:$0xff]  }
  0x18   : > { %194 = vst [vmem:[%s2132_s26 + $0x50] sm:$0xff] %v193_v10   ;;  %198 = vst [vmem:[%s2132_s26 + $0x58] sm:$0xff] %v197_v11   ;;  %v205_v13 = vld [vmem:[%s2127_s25 + $0xb0] sm:$0xff]   ;;  %v209_v14 = vld [vmem:[%s2127_s25 + $0xb8] sm:$0xff]  }
  0x19   : > { %202 = vst [vmem:[%s2132_s26 + $0x60] sm:$0xff] %v201_v12   ;;  %206 = vst [vmem:[%s2132_s26 + $0x68] sm:$0xff] %v205_v13   ;;  %v213_v15 = vld [vmem:[%s2127_s25 + $0xc0] sm:$0xff]   ;;  %v217_v16 = vld [vmem:[%s2127_s25 + $0xc8] sm:$0xff]  }
  0x1a   : > { %210 = vst [vmem:[%s2132_s26 + $0x70] sm:$0xff] %v209_v14   ;;  %v221_v17 = vld [vmem:[%s2127_s25 + $0xd0] sm:$0xff]   ;;  %214 = vst [vmem:[%s2132_s26 + $0x78] sm:$0xff] %v213_v15   ;;  %v225_v18 = vld [vmem:[%s2127_s25 + $0x120] sm:$0xff]  }
  0x1b   : > { %218 = vst [vmem:[%s2132_s26 + $0x80] sm:$0xff] %v217_v16   ;;  %222 = vst [vmem:[%s2132_s26 + $0x88] sm:$0xff] %v221_v17   ;;  %v229_v19 = vld [vmem:[%s2127_s25 + $0x128] sm:$0xff]   ;;  %v233_v20 = vld [vmem:[%s2127_s25 + $0x130] sm:$0xff]  }
  0x1c   : > { %226 = vst [vmem:[%s2132_s26 + $0x90] sm:$0xff] %v225_v18   ;;  %230 = vst [vmem:[%s2132_s26 + $0x98] sm:$0xff] %v229_v19   ;;  %v237_v21 = vld [vmem:[%s2127_s25 + $0x138] sm:$0xff]   ;;  %v241_v22 = vld [vmem:[%s2127_s25 + $0x140] sm:$0xff]  }
  0x1d   : > { %234 = vst [vmem:[%s2132_s26 + $0xa0] sm:$0xff] %v233_v20   ;;  %v245_v23 = vld [vmem:[%s2127_s25 + $0x148] sm:$0xff]   ;;  %238 = vst [vmem:[%s2132_s26 + $0xa8] sm:$0xff] %v237_v21   ;;  %v249_v24 = vld [vmem:[%s2127_s25 + $0x150] sm:$0xff]  }
  0x1e   : > { %242 = vst [vmem:[%s2132_s26 + $0xb0] sm:$0xff] %v241_v22   ;;  %246 = vst [vmem:[%s2132_s26 + $0xb8] sm:$0xff] %v245_v23   ;;  %v253_v25 = vld [vmem:[%s2127_s25 + $0x158] sm:$0xff]   ;;  %v257_v26 = vld [vmem:[%s2127_s25 + $0x160] sm:$0xff]  }
  0x1f   : > { %250 = vst [vmem:[%s2132_s26 + $0xc0] sm:$0xff] %v249_v24   ;;  %254 = vst [vmem:[%s2132_s26 + $0xc8] sm:$0xff] %v253_v25   ;;  %v261_v27 = vld [vmem:[%s2127_s25 + $0x1b0] sm:$0xff]   ;;  %v265_v28 = vld [vmem:[%s2127_s25 + $0x1b8] sm:$0xff]  }
  0x20   : > { %258 = vst [vmem:[%s2132_s26 + $0xd0] sm:$0xff] %v257_v26   ;;  %v269_v29 = vld [vmem:[%s2127_s25 + $0x1c0] sm:$0xff]   ;;  %262 = vst [vmem:[%s2132_s26 + $0xd8] sm:$0xff] %v261_v27   ;;  %v273_v30 = vld [vmem:[%s2127_s25 + $0x1c8] sm:$0xff]  }
  0x21   : > { %266 = vst [vmem:[%s2132_s26 + $0xe0] sm:$0xff] %v265_v28   ;;  %270 = vst [vmem:[%s2132_s26 + $0xe8] sm:$0xff] %v269_v29   ;;  %v277_v31 = vld [vmem:[%s2127_s25 + $0x1d0] sm:$0xff]   ;;  %v281_v32 = vld [vmem:[%s2127_s25 + $0x1d8] sm:$0xff]  }
  0x22   : > { %274 = vst [vmem:[%s2132_s26 + $0xf0] sm:$0xff] %v273_v30   ;;  %278 = vst [vmem:[%s2132_s26 + $0xf8] sm:$0xff] %v277_v31   ;;  %v285_v33 = vld [vmem:[%s2127_s25 + $0x1e0] sm:$0xff]   ;;  %v289_v34 = vld [vmem:[%s2127_s25 + $0x1e8] sm:$0xff]  }
  0x23   : > { %282 = vst [vmem:[%s2132_s26 + $0x100] sm:$0xff] %v281_v32   ;;  %v293_v35 = vld [vmem:[%s2127_s25 + $0x1f0] sm:$0xff]   ;;  %286 = vst [vmem:[%s2132_s26 + $0x108] sm:$0xff] %v285_v33  }
  0x24   : > { %290 = vst [vmem:[%s2132_s26 + $0x110] sm:$0xff] %v289_v34   ;;  %294 = vst [vmem:[%s2132_s26 + $0x118] sm:$0xff] %v293_v35  }
  0x25 PF: > { %p1554_p5 = scmp.ge.s32.totalorder %s2069_s14, 1  ;;  %p462_p6 = scmp.lt.s32.totalorder %s2069_s14, 3 }
  0x27   : > { %p463_p7 = pnand %p1554_p5, %p462_p6 }
  0x28   : > { %v2009_v36 = vld [vmem:[%s2578_s1] sm:$0xff] (!%p463_p7)   ;;  %v2071_v37 = vmov (!%p463_p7), 0.0   ;;  %v2010_v38 = vld [vmem:[%s2578_s1 + $0x8] sm:$0xff] (!%p463_p7)   ;;  %s469_s4 = sand.u32 (!%p463_p7), 1, %s2061_s12   ;;  %vm2072_vm0 = vmmov (!%p463_p7), 0   ;;  %vm579_vm1 = vcmask (!%p463_p7), 261120  }
  0x29   : > { %466 = sbr.rel (%p463_p7) target bundleno = 410 (0x19a), region = 69  ;;  %1821 = vmatprep.subr.bf16.mxu0 (!%p463_p7), %v2071_v37  ;;  %1861 = vmatprep.subr.bf16.mxu1 (!%p463_p7), %v2071_v37 }
  0x2a   : > { %1822 = vmatpush3.bf16.msra.mxu0 (!%p463_p7), %v2009_v36  ;;  %1862 = vmatpush3.bf16.msra.mxu1 (!%p463_p7), %v2009_v36  ;;  %s1982_s5 = smul.u32 (!%p463_p7), 288, %s469_s4 }
  0x2b   : > { %1823 = vmatprep.subr.bf16.mxu0 (!%p463_p7), %v2071_v37  ;;  %1863 = vmatprep.subr.bf16.mxu1 (!%p463_p7), %v2071_v37  ;;  %s493_s7 = smul.u32 (!%p463_p7), 18, %s1549_s15 }
  0x2c   : > { %1825 = vmatprep.mubr.msk.bf16.mxu0 (!%p463_p7), %vm2072_vm0, %v2071_v37  ;;  %1865 = vmatprep.mubr.msk.bf16.mxu1 (!%p463_p7), %vm2072_vm0, %v2071_v37  ;;  %s2220_s6 = scalar_lea.vmem (!%p463_p7), [#allocation2], %s1982_s5 }
  0x2d   : > { %v2011_v39 = vld [vmem:[%s2220_s6] sm:$0xff] (!%p463_p7)   ;;  %v2012_v40 = vld [vmem:[%s2220_s6 + $0x48] sm:$0xff] (!%p463_p7)   ;;  %v2014_v42 = vld [vmem:[%s2220_s6 + $0x50] sm:$0xff] (!%p463_p7)   ;;  %p494_p8 = scmp.lt.s32.totalorder (!%p463_p7), %s493_s7, 35 }
  0x2e   : > { %1824 = vmatpush3.bf16.msra.mxu0 (!%p463_p7), %v2010_v38  ;;  %1864 = vmatpush3.bf16.msra.mxu1 (!%p463_p7), %v2010_v38  ;;  %v2013_v41 = vld [vmem:[%s2220_s6 + $0x8] sm:$0xff] (!%p463_p7)   ;;  %v2015_v43 = vld [vmem:[%s2220_s6 + $0x10] sm:$0xff] (!%p463_p7)   ;;  %v2016_v44 = vld [vmem:[%s2220_s6 + $0x58] sm:$0xff] (!%p463_p7)  }
  0x2f   : > { %1901 = vmatprep.subr.bf16.mxu0 (!%p463_p7), %v2071_v37  ;;  %1941 = vmatprep.subr.bf16.mxu1 (!%p463_p7), %v2071_v37  ;;  %v2017_v45 = vld [vmem:[%s2220_s6 + $0x18] sm:$0xff] (!%p463_p7)   ;;  %v2018_v46 = vld [vmem:[%s2220_s6 + $0x60] sm:$0xff] (!%p463_p7)   ;;  %v2020_v48 = vld [vmem:[%s2220_s6 + $0x68] sm:$0xff] (!%p463_p7)  }
  0x30   : > { %v2019_v47 = vld [vmem:[%s2220_s6 + $0x20] sm:$0xff]   ;;  %v2021_v49 = vld [vmem:[%s2220_s6 + $0x28] sm:$0xff]   ;;  %v2022_v50 = vld [vmem:[%s2220_s6 + $0x70] sm:$0xff]   ;;  %s2591_s7 = smov (!%p494_p8, %s493_s7), 35 }
  0x31   : > { %1826 = vmatmul.mubr.msk.bf16.vlgmr.msra.gmra.mrb[0].mxu0 %vm579_vm1, %v2011_v39  ;;  %1866 = vmatmul.mubr.msk.bf16.vlgmr.msra.gmra.mrb[0].mxu1 %vm579_vm1, %v2012_v40  ;;  %v2023_v51 = vld [vmem:[%s2220_s6 + $0x30] sm:$0xff]   ;;  %v2024_v52 = vld [vmem:[%s2220_s6 + $0x78] sm:$0xff]   ;;  %v2026_v54 = vld [vmem:[%s2220_s6 + $0x80] sm:$0xff]   ;;  %s1555_s10 = sshll.u32 %s2591_s7, 2 }
  0x32   : > { %1902 = vmatpush3.bf16.msra.mxu0 %v2009_v36  ;;  %1942 = vmatpush3.bf16.msra.mxu1 %v2009_v36  ;;  %v2025_v53 = vld [vmem:[%s2220_s6 + $0x38] sm:$0xff]   ;;  %v2027_v55 = vld [vmem:[%s2220_s6 + $0x40] sm:$0xff]   ;;  %v2028_v56 = vld [vmem:[%s2220_s6 + $0x88] sm:$0xff]   ;;  %s2492_s14 = scalar_lea.vmem %s2580_s3, %s1555_s10 }
  0x33   : > { %1829 = vmatprep.mubr.msk.bf16.mxu0 %vm2072_vm0, %v2071_v37  ;;  %1869 = vmatprep.mubr.msk.bf16.mxu1 %vm2072_vm0, %v2071_v37  ;;  %v2029_v57 = vld [vmem:[%s2220_s6 + $0x90] sm:$0xff]   ;;  %v2030_v58 = vld [vmem:[%s2220_s6 + $0xd8] sm:$0xff]   ;;  %v2032_v60 = vld [vmem:[%s2220_s6 + $0xe0] sm:$0xff]  }
  0x34   : > { %1903 = vmatprep.subr.bf16.mxu0 %v2071_v37  ;;  %1943 = vmatprep.subr.bf16.mxu1 %v2071_v37  ;;  %v2031_v59 = vld [vmem:[%s2220_s6 + $0x98] sm:$0xff]   ;;  %v2033_v61 = vld [vmem:[%s2220_s6 + $0xa0] sm:$0xff]   ;;  %v2034_v62 = vld [vmem:[%s2220_s6 + $0xe8] sm:$0xff]  }
  0x35   : > { %v2035_v63 = vld [vmem:[%s2220_s6 + $0xa8] sm:$0xff]   ;;  %v2036_v0 = vld [vmem:[%s2220_s6 + $0xf0] sm:$0xff]   ;;  %v2038_v2 = vld [vmem:[%s2220_s6 + $0xf8] sm:$0xff]  }
  0x36   : > { %1904 = vmatpush3.bf16.msra.mxu0 %v2010_v38  ;;  %1944 = vmatpush3.bf16.msra.mxu1 %v2010_v38  ;;  %v2037_v1 = vld [vmem:[%s2220_s6 + $0xb0] sm:$0xff]   ;;  %v2039_v3 = vld [vmem:[%s2220_s6 + $0xb8] sm:$0xff]   ;;  %v2040_v4 = vld [vmem:[%s2220_s6 + $0x100] sm:$0xff]  }
  0x37   : > { %v2041_v5 = vld [vmem:[%s2220_s6 + $0xc0] sm:$0xff]   ;;  %v2042_v6 = vld [vmem:[%s2220_s6 + $0x108] sm:$0xff]   ;;  %v2044_v8 = vld [vmem:[%s2220_s6 + $0x110] sm:$0xff]  }
  0x38   : > { %v2043_v7 = vld [vmem:[%s2220_s6 + $0xc8] sm:$0xff]   ;;  %v2045_v9 = vld [vmem:[%s2220_s6 + $0xd0] sm:$0xff]   ;;  %v2046_v10 = vld [vmem:[%s2220_s6 + $0x118] sm:$0xff]  }
  0x39   : > { %1830 = vmatmul.mubr.msk.bf16.gmra.mrb[4].mxu0 %vm579_vm1, %v2013_v41  ;;  %1870 = vmatmul.mubr.msk.bf16.gmra.mrb[4].mxu1 %vm579_vm1, %v2014_v42 }
  0x3a   : > { %1833 = vmatprep.mubr.msk.bf16.mxu0 %vm2072_vm0, %v2071_v37  ;;  %1873 = vmatprep.mubr.msk.bf16.mxu1 %vm2072_vm0, %v2071_v37 }
  0x41   : > { %1834 = vmatmul.mubr.msk.bf16.gmra.mrb[8].mxu0 %vm579_vm1, %v2015_v43  ;;  %1874 = vmatmul.mubr.msk.bf16.gmra.mrb[8].mxu1 %vm579_vm1, %v2016_v44 }
  0x42   : > { %1837 = vmatprep.mubr.msk.bf16.mxu0 %vm2072_vm0, %v2071_v37  ;;  %1877 = vmatprep.mubr.msk.bf16.mxu1 %vm2072_vm0, %v2071_v37 }
  0x49   : > { %1838 = vmatmul.mubr.msk.bf16.gmra.mrb[12].mxu0 %vm579_vm1, %v2017_v45  ;;  %1878 = vmatmul.mubr.msk.bf16.gmra.mrb[12].mxu1 %vm579_vm1, %v2018_v46 }
  0x4a   : > { %1841 = vmatprep.mubr.msk.bf16.mxu0 %vm2072_vm0, %v2071_v37  ;;  %1881 = vmatprep.mubr.msk.bf16.mxu1 %vm2072_vm0, %v2071_v37 }
  0x51   : > { %1842 = vmatmul.mubr.msk.bf16.gmra.mrb[16].mxu0 %vm579_vm1, %v2019_v47  ;;  %1882 = vmatmul.mubr.msk.bf16.gmra.mrb[16].mxu1 %vm579_vm1, %v2020_v48 }
  0x52   : > { %1845 = vmatprep.mubr.msk.bf16.mxu0 %vm2072_vm0, %v2071_v37  ;;  %1885 = vmatprep.mubr.msk.bf16.mxu1 %vm2072_vm0, %v2071_v37 }
  0x59   : > { %1846 = vmatmul.mubr.msk.bf16.gmra.mrb[20].mxu0 %vm579_vm1, %v2021_v49  ;;  %1886 = vmatmul.mubr.msk.bf16.gmra.mrb[20].mxu1 %vm579_vm1, %v2022_v50 }
  0x5a   : > { %1849 = vmatprep.mubr.msk.bf16.mxu0 %vm2072_vm0, %v2071_v37  ;;  %1889 = vmatprep.mubr.msk.bf16.mxu1 %vm2072_vm0, %v2071_v37 }
  0x61   : > { %1850 = vmatmul.mubr.msk.bf16.gmra.mrb[24].mxu0 %vm579_vm1, %v2023_v51  ;;  %1890 = vmatmul.mubr.msk.bf16.gmra.mrb[24].mxu1 %vm579_vm1, %v2024_v52 }
  0x62   : > { %1853 = vmatprep.mubr.msk.bf16.mxu0 %vm2072_vm0, %v2071_v37  ;;  %1893 = vmatprep.mubr.msk.bf16.mxu1 %vm2072_vm0, %v2071_v37 }
  0x69   : > { %1854 = vmatmul.mubr.msk.bf16.gmra.mrb[28].mxu0 %vm579_vm1, %v2025_v53  ;;  %1894 = vmatmul.mubr.msk.bf16.gmra.mrb[28].mxu1 %vm579_vm1, %v2026_v54 }
  0x6a   : > { %1857 = vmatprep.mubr.msk.bf16.mxu0 %vm2072_vm0, %v2071_v37  ;;  %1897 = vmatprep.mubr.msk.bf16.mxu1 %vm2072_vm0, %v2071_v37 }
  0x71   : > { %1858 = vmatmul.mubr.msk.bf16.gmra.mrb[32].mxu0 %vm579_vm1, %v2027_v55  ;;  %1898 = vmatmul.mubr.msk.bf16.gmra.mrb[32].mxu1 %vm579_vm1, %v2028_v56 }
  0x72   : > { %1905 = vmatprep.mubr.msk.bf16.mxu0 %vm2072_vm0, %v2071_v37  ;;  %1945 = vmatprep.mubr.msk.bf16.mxu1 %vm2072_vm0, %v2071_v37 }
  0x79   : > { %1906 = vmatmul.mubr.msk.bf16.vlgmr.msra.gmra.mrb[36].mxu0 %vm579_vm1, %v2029_v57  ;;  %1946 = vmatmul.mubr.msk.bf16.vlgmr.msra.gmra.mrb[36].mxu1 %vm579_vm1, %v2030_v58 }
  0x7a   : > { %1909 = vmatprep.mubr.msk.bf16.mxu0 %vm2072_vm0, %v2071_v37  ;;  %1949 = vmatprep.mubr.msk.bf16.mxu1 %vm2072_vm0, %v2071_v37 }
  0x81   : > { %1910 = vmatmul.mubr.msk.bf16.gmra.mrb[40].mxu0 %vm579_vm1, %v2031_v59  ;;  %1950 = vmatmul.mubr.msk.bf16.gmra.mrb[40].mxu1 %vm579_vm1, %v2032_v60 }
  0x82   : > { %1913 = vmatprep.mubr.msk.bf16.mxu0 %vm2072_vm0, %v2071_v37  ;;  %1953 = vmatprep.mubr.msk.bf16.mxu1 %vm2072_vm0, %v2071_v37 }
  0x89   : > { %1914 = vmatmul.mubr.msk.bf16.gmra.mrb[44].mxu0 %vm579_vm1, %v2033_v61  ;;  %1954 = vmatmul.mubr.msk.bf16.gmra.mrb[44].mxu1 %vm579_vm1, %v2034_v62 }
  0x8a   : > { %1917 = vmatprep.mubr.msk.bf16.mxu0 %vm2072_vm0, %v2071_v37  ;;  %1957 = vmatprep.mubr.msk.bf16.mxu1 %vm2072_vm0, %v2071_v37 }
  0x91   : > { %1918 = vmatmul.mubr.msk.bf16.gmra.mrb[48].mxu0 %vm579_vm1, %v2035_v63  ;;  %1958 = vmatmul.mubr.msk.bf16.gmra.mrb[48].mxu1 %vm579_vm1, %v2036_v0 }
  0x92   : > { %1921 = vmatprep.mubr.msk.bf16.mxu0 %vm2072_vm0, %v2071_v37  ;;  %1961 = vmatprep.mubr.msk.bf16.mxu1 %vm2072_vm0, %v2071_v37 }
  0x99   : > { %1922 = vmatmul.mubr.msk.bf16.gmra.mrb[52].mxu0 %vm579_vm1, %v2037_v1  ;;  %1962 = vmatmul.mubr.msk.bf16.gmra.mrb[52].mxu1 %vm579_vm1, %v2038_v2 }
  0x9a   : > { %1925 = vmatprep.mubr.msk.bf16.mxu0 %vm2072_vm0, %v2071_v37  ;;  %1965 = vmatprep.mubr.msk.bf16.mxu1 %vm2072_vm0, %v2071_v37 }
  0xa1   : > { %1926 = vmatmul.mubr.msk.bf16.gmra.mrb[56].mxu0 %vm579_vm1, %v2039_v3  ;;  %1966 = vmatmul.mubr.msk.bf16.gmra.mrb[56].mxu1 %vm579_vm1, %v2040_v4 }
  0xa2   : > { %1929 = vmatprep.mubr.msk.bf16.mxu0 %vm2072_vm0, %v2071_v37  ;;  %1969 = vmatprep.mubr.msk.bf16.mxu1 %vm2072_vm0, %v2071_v37 }
  0xa9   : > { %1930 = vmatmul.mubr.msk.bf16.gmra.mrb[60].mxu0 %vm579_vm1, %v2041_v5  ;;  %1970 = vmatmul.mubr.msk.bf16.gmra.mrb[60].mxu1 %vm579_vm1, %v2042_v6 }
  0xaa   : > { %1933 = vmatprep.mubr.msk.bf16.mxu0 %vm2072_vm0, %v2071_v37  ;;  %1973 = vmatprep.mubr.msk.bf16.mxu1 %vm2072_vm0, %v2071_v37 }
  0xb1   : > { %1934 = vmatmul.mubr.msk.bf16.gmra.mrb[64].mxu0 %vm579_vm1, %v2043_v7  ;;  %1974 = vmatmul.mubr.msk.bf16.gmra.mrb[64].mxu1 %vm579_vm1, %v2044_v8 }
  0xb2   : > { %1937 = vmatprep.mubr.msk.bf16.mxu0 %vm2072_vm0, %v2071_v37  ;;  %1977 = vmatprep.mubr.msk.bf16.mxu1 %vm2072_vm0, %v2071_v37 }
  0xb9   : > { %1938 = vmatmul.mubr.msk.bf16.gmra.mrb[68].mxu0 %vm579_vm1, %v2045_v9  ;;  %1978 = vmatmul.mubr.msk.bf16.gmra.mrb[68].mxu1 %vm579_vm1, %v2046_v10 }
 0x104   : > { %v2366_v11 = vpop.f32.mrb[0].mxu0  ;;  %v2368_v12 = vpop.f32.mrb[0].mxu1 }
 0x105   : > { %v1300_v13 = vmax.f32 %v2366_v11, %v2368_v12  ;;  %v1827_v14 = vpop.f32.mrb[1].mxu0  ;;  %v1867_v15 = vpop.f32.mrb[1].mxu1 }
 0x106   : > { %v2372_v16 = vpop.f32.mrb[2].mxu0  ;;  %v2374_v17 = vpop.f32.mrb[2].mxu1 }
 0x107   : > { %v1301_v18 = vmax.f32 %v2372_v16, %v2374_v17  ;;  %v1828_v19 = vpop.f32.mrb[3].mxu0  ;;  %v1868_v20 = vpop.f32.mrb[3].mxu1 }
 0x10c   : > { %v2378_v21 = vpop.f32.mrb[4].mxu0  ;;  %v2380_v22 = vpop.f32.mrb[4].mxu1 }
 0x10d   : > { %v1302_v23 = vmax.f32 %v2378_v21, %v2380_v22  ;;  %v1831_v24 = vpop.f32.mrb[5].mxu0  ;;  %v1871_v25 = vpop.f32.mrb[5].mxu1 }
 0x10e   : > { %v2384_v26 = vpop.f32.mrb[6].mxu0  ;;  %v2386_v27 = vpop.f32.mrb[6].mxu1 }
 0x10f   : > { %v1303_v28 = vmax.f32 %v2384_v26, %v2386_v27  ;;  %v1832_v29 = vpop.f32.mrb[7].mxu0  ;;  %v1872_v30 = vpop.f32.mrb[7].mxu1 }
 0x114   : > { %v2390_v31 = vpop.f32.mrb[8].mxu0  ;;  %v2392_v32 = vpop.f32.mrb[8].mxu1 }
 0x115   : > { %v1304_v33 = vmax.f32 %v2390_v31, %v2392_v32  ;;  %v1835_v34 = vpop.f32.mrb[9].mxu0  ;;  %v1875_v35 = vpop.f32.mrb[9].mxu1 }
 0x116   : > { %v2396_v36 = vpop.f32.mrb[10].mxu0  ;;  %v2398_v37 = vpop.f32.mrb[10].mxu1 }
 0x117   : > { %v1305_v38 = vmax.f32 %v2396_v36, %v2398_v37  ;;  %v1836_v39 = vpop.f32.mrb[11].mxu0  ;;  %v1876_v40 = vpop.f32.mrb[11].mxu1 }
 0x11c   : > { %v2402_v41 = vpop.f32.mrb[12].mxu0  ;;  %v2404_v42 = vpop.f32.mrb[12].mxu1 }
 0x11d   : > { %v1306_v43 = vmax.f32 %v2402_v41, %v2404_v42  ;;  %v1839_v44 = vpop.f32.mrb[13].mxu0  ;;  %v1879_v45 = vpop.f32.mrb[13].mxu1 }
 0x11e   : > { %v2408_v46 = vpop.f32.mrb[14].mxu0  ;;  %v2410_v47 = vpop.f32.mrb[14].mxu1 }
 0x11f   : > { %v1307_v48 = vmax.f32 %v2408_v46, %v2410_v47  ;;  %v1840_v49 = vpop.f32.mrb[15].mxu0  ;;  %v1880_v50 = vpop.f32.mrb[15].mxu1 }
 0x124   : > { %v2414_v51 = vpop.f32.mrb[16].mxu0  ;;  %v2416_v52 = vpop.f32.mrb[16].mxu1 }
 0x125   : > { %v1308_v53 = vmax.f32 %v2414_v51, %v2416_v52  ;;  %v1843_v54 = vpop.f32.mrb[17].mxu0  ;;  %v1883_v55 = vpop.f32.mrb[17].mxu1 }
 0x126   : > { %v2420_v56 = vpop.f32.mrb[18].mxu0  ;;  %v2422_v57 = vpop.f32.mrb[18].mxu1 }
 0x127   : > { %v1309_v58 = vmax.f32 %v2420_v56, %v2422_v57  ;;  %v1844_v59 = vpop.f32.mrb[19].mxu0  ;;  %v1884_v60 = vpop.f32.mrb[19].mxu1 }
 0x12c   : > { %v2426_v61 = vpop.f32.mrb[20].mxu0  ;;  %v2428_v62 = vpop.f32.mrb[20].mxu1 }
 0x12d   : > { %v1310_v63 = vmax.f32 %v2426_v61, %v2428_v62  ;;  %v1847_v0 = vpop.f32.mrb[21].mxu0  ;;  %v1887_v1 = vpop.f32.mrb[21].mxu1 }
 0x12e   : > { %v2432_v2 = vpop.f32.mrb[22].mxu0  ;;  %v2434_v3 = vpop.f32.mrb[22].mxu1 }
 0x12f   : > { %v1311_v4 = vmax.f32 %v2432_v2, %v2434_v3  ;;  %v1848_v5 = vpop.f32.mrb[23].mxu0  ;;  %v1888_v6 = vpop.f32.mrb[23].mxu1 }
 0x134   : > { %v2438_v7 = vpop.f32.mrb[24].mxu0  ;;  %v2440_v8 = vpop.f32.mrb[24].mxu1 }
 0x135   : > { %v1851_v10 = vpop.f32.mrb[25].mxu0  ;;  %v1891_v14 = vpop.f32.mrb[25].mxu1 }
 0x136   : > { %v2444_v15 = vpop.f32.mrb[26].mxu0  ;;  %v2446_v19 = vpop.f32.mrb[26].mxu1 }
 0x137   : > { %v1852_v24 = vpop.f32.mrb[27].mxu0  ;;  %v1892_v25 = vpop.f32.mrb[27].mxu1 }
 0x13c   : > { %v2450_v29 = vpop.f32.mrb[28].mxu0  ;;  %v2452_v30 = vpop.f32.mrb[28].mxu1 }
 0x13d   : > { %v1855_v35 = vpop.f32.mrb[29].mxu0  ;;  %v1895_v39 = vpop.f32.mrb[29].mxu1 }
 0x13e   : > { %v2456_v40 = vpop.f32.mrb[30].mxu0  ;;  %v2458_v44 = vpop.f32.mrb[30].mxu1 }
 0x13f   : > { %v1856_v49 = vpop.f32.mrb[31].mxu0  ;;  %v1896_v50 = vpop.f32.mrb[31].mxu1 }
 0x140   : > { %v2479_v50 = vld [vmem:[%s2579_s2] ss:$0 sm:$0xff] }
 0x144   : > { %v2462_v54 = vpop.f32.mrb[32].mxu0  ;;  %v2464_v55 = vpop.f32.mrb[32].mxu1 }
 0x145   : > { %v1859_v60 = vpop.f32.mrb[33].mxu0  ;;  %v1899_v0 = vpop.f32.mrb[33].mxu1 }
 0x146   : > { %v2468_v1 = vpop.f32.mrb[34].mxu0  ;;  %v2470_v5 = vpop.f32.mrb[34].mxu1 }
 0x147   : > { %v1860_v10 = vpop.f32.mrb[35].mxu0  ;;  %v1900_v14 = vpop.f32.mrb[35].mxu1 }
 0x14c   : > { %v1033_v24 = vpop.f32.mrb[36].mxu0  ;;  %v1229_v25 = vpop.f32.mrb[36].mxu1 }
 0x14d   : > { %v1318_v35 = vmax.f32 %v1033_v24, %v1229_v25  ;;  %v1907_v39 = vpop.f32.mrb[37].mxu0  ;;  %v1947_v49 = vpop.f32.mrb[37].mxu1 }
 0x14e   : > { %v1036_v60 = vpop.f32.mrb[38].mxu0  ;;  %v1232_v0 = vpop.f32.mrb[38].mxu1 }
 0x14f   : > { %v1336_v10 = vmax.f32 %v1300_v13, %v1318_v35  ;;  %v1319_v14 = vmax.f32 %v1036_v60, %v1232_v0  ;;  %v1908_v6 = vpop.f32.mrb[39].mxu0  ;;  %v1948_v59 = vpop.f32.mrb[39].mxu1 }
 0x151   : > { %v1361_v45 = vadd.f32 %v2479_v50, %v1336_v10  ;;  %v1337_v24 = vmax.f32 %v1301_v18, %v1319_v14 }
 0x153   : > { %v1362_v25 = vadd.f32 %v2479_v50, %v1337_v24  ;;  %v1379_v34 = vmax.f32 %v1361_v45, 0.0 }
 0x154   : > { %v1041_v39 = vpop.f32.mrb[40].mxu0  ;;  %v1237_v49 = vpop.f32.mrb[40].mxu1 }
 0x155   : > { %v1380_v20 = vmax.f32 %v1362_v25, 0.0  ;;  %v1320_v9 = vmax.f32 %v1041_v39, %v1237_v49  ;;  %v1911_v11 = vpop.f32.mrb[41].mxu0  ;;  %v1951_v12 = vpop.f32.mrb[41].mxu1 }
 0x156   : > { %v1044_v13 = vpop.f32.mrb[42].mxu0  ;;  %v1240_v59 = vpop.f32.mrb[42].mxu1 }
 0x157   : > { %v1727_v16 = vpack.c.bf16 %v1380_v20, %v1379_v34  ;;  %v1338_v17 = vmax.f32 %v1302_v23, %v1320_v9  ;;  %v1321_v18 = vmax.f32 %v1044_v13, %v1240_v59  ;;  %v1912_v6 = vpop.f32.mrb[43].mxu0  ;;  %v1952_v45 = vpop.f32.mrb[43].mxu1 }
 0x159   : > { %1728 = vst [vmem:[%s2492_s14] sm:$0xff] %v1727_v16   ;;  %v1363_v35 = vadd.f32 %v2479_v50, %v1338_v17  ;;  %v1339_v60 = vmax.f32 %v1303_v28, %v1321_v18 }
 0x15b   : > { %v1364_v0 = vadd.f32 %v2479_v50, %v1339_v60  ;;  %v1381_v20 = vmax.f32 %v1363_v35, 0.0 }
 0x15c   : > { %v1049_v10 = vpop.f32.mrb[44].mxu0  ;;  %v1245_v14 = vpop.f32.mrb[44].mxu1 }
 0x15d   : > { %v1382_v34 = vmax.f32 %v1364_v0, 0.0  ;;  %v1322_v24 = vmax.f32 %v1049_v10, %v1245_v14  ;;  %v1915_v21 = vpop.f32.mrb[45].mxu0  ;;  %v1955_v22 = vpop.f32.mrb[45].mxu1 }
 0x15e   : > { %v1052_v23 = vpop.f32.mrb[46].mxu0  ;;  %v1248_v9 = vpop.f32.mrb[46].mxu1 }
 0x15f   : > { %v1732_v25 = vpack.c.bf16 %v1382_v34, %v1381_v20  ;;  %v1340_v39 = vmax.f32 %v1304_v33, %v1322_v24  ;;  %v1323_v49 = vmax.f32 %v1052_v23, %v1248_v9  ;;  %v1916_v26 = vpop.f32.mrb[47].mxu0  ;;  %v1956_v27 = vpop.f32.mrb[47].mxu1 }
 0x161   : > { %1769 = vst [vmem:[%s2492_s14 + $0x8] sm:$0xff] %v1732_v25   ;;  %v1365_v28 = vadd.f32 %v2479_v50, %v1340_v39  ;;  %v1341_v11 = vmax.f32 %v1305_v38, %v1323_v49 }
 0x163   : > { %v1366_v12 = vadd.f32 %v2479_v50, %v1341_v11  ;;  %v1383_v16 = vmax.f32 %v1365_v28, 0.0 }
 0x164   : > { %v1057_v13 = vpop.f32.mrb[48].mxu0  ;;  %v1253_v59 = vpop.f32.mrb[48].mxu1 }
 0x165   : > { %v1384_v17 = vmax.f32 %v1366_v12, 0.0  ;;  %v1324_v18 = vmax.f32 %v1057_v13, %v1253_v59  ;;  %v1919_v31 = vpop.f32.mrb[49].mxu0  ;;  %v1959_v32 = vpop.f32.mrb[49].mxu1 }
 0x166   : > { %v1060_v33 = vpop.f32.mrb[50].mxu0  ;;  %v1256_v6 = vpop.f32.mrb[50].mxu1 }
 0x167   : > { %v1737_v45 = vpack.c.bf16 %v1384_v17, %v1383_v16  ;;  %v1342_v35 = vmax.f32 %v1306_v43, %v1324_v18  ;;  %v1325_v60 = vmax.f32 %v1060_v33, %v1256_v6  ;;  %v1920_v36 = vpop.f32.mrb[51].mxu0  ;;  %v1960_v37 = vpop.f32.mrb[51].mxu1 }
 0x168   : > { %v2581_v37 = vmax.f32 %v2438_v7, %v2440_v8 }
 0x169   : > { %1770 = vst [vmem:[%s2492_s14 + $0x10] sm:$0xff] %v1737_v45   ;;  %v1367_v38 = vadd.f32 %v2479_v50, %v1342_v35  ;;  %v1343_v0 = vmax.f32 %v1307_v48, %v1325_v60 }
 0x16b   : > { %v1368_v10 = vadd.f32 %v2479_v50, %v1343_v0  ;;  %v1385_v34 = vmax.f32 %v1367_v38, 0.0 }
 0x16c   : > { %v1065_v14 = vpop.f32.mrb[52].mxu0  ;;  %v1261_v20 = vpop.f32.mrb[52].mxu1 }
 0x16d   : > { %v1386_v24 = vmax.f32 %v1368_v10, 0.0  ;;  %v1326_v21 = vmax.f32 %v1065_v14, %v1261_v20  ;;  %v1923_v41 = vpop.f32.mrb[53].mxu0  ;;  %v1963_v42 = vpop.f32.mrb[53].mxu1  ;;  %v2582_v10 = vmax.f32 %v2444_v15, %v2446_v19 }
 0x16e   : > { %v1068_v43 = vpop.f32.mrb[54].mxu0  ;;  %v1264_v22 = vpop.f32.mrb[54].mxu1 }
 0x16f   : > { %v1742_v23 = vpack.c.bf16 %v1386_v24, %v1385_v34  ;;  %v1344_v9 = vmax.f32 %v1308_v53, %v1326_v21  ;;  %v1327_v25 = vmax.f32 %v1068_v43, %v1264_v22  ;;  %v1924_v46 = vpop.f32.mrb[55].mxu0  ;;  %v1964_v47 = vpop.f32.mrb[55].mxu1 }
 0x171   : > { %1771 = vst [vmem:[%s2492_s14 + $0x18] sm:$0xff] %v1742_v23   ;;  %v1369_v48 = vadd.f32 %v2479_v50, %v1344_v9  ;;  %v1345_v39 = vmax.f32 %v1309_v58, %v1327_v25  ;;  %v2583_v9 = vmax.f32 %v2450_v29, %v2452_v30 }
 0x173   : > { %v1370_v49 = vadd.f32 %v2479_v50, %v1345_v39  ;;  %v1387_v28 = vmax.f32 %v1369_v48, 0.0  ;;  %v2584_v48 = vmax.f32 %v2456_v40, %v2458_v44 }
 0x174   : > { %v1073_v26 = vpop.f32.mrb[56].mxu0  ;;  %v1269_v27 = vpop.f32.mrb[56].mxu1 }
 0x175   : > { %v1388_v11 = vmax.f32 %v1370_v49, 0.0  ;;  %v1328_v12 = vmax.f32 %v1073_v26, %v1269_v27  ;;  %v1927_v51 = vpop.f32.mrb[57].mxu0  ;;  %v1967_v52 = vpop.f32.mrb[57].mxu1 }
 0x176   : > { %v1076_v53 = vpop.f32.mrb[58].mxu0  ;;  %v1272_v13 = vpop.f32.mrb[58].mxu1 }
 0x177   : > { %v1747_v59 = vpack.c.bf16 %v1388_v11, %v1387_v28  ;;  %v1346_v16 = vmax.f32 %v1310_v63, %v1328_v12  ;;  %v1329_v17 = vmax.f32 %v1076_v53, %v1272_v13  ;;  %v1928_v56 = vpop.f32.mrb[59].mxu0  ;;  %v1968_v57 = vpop.f32.mrb[59].mxu1  ;;  %v2585_v13 = vmax.f32 %v2462_v54, %v2464_v55 }
 0x178   : > { %v2586_v56 = vmax.f32 %v2468_v1, %v2470_v5 }
 0x179   : > { %1772 = vst [vmem:[%s2492_s14 + $0x20] sm:$0xff] %v1747_v59   ;;  %v1371_v58 = vadd.f32 %v2479_v50, %v1346_v16  ;;  %v1347_v18 = vmax.f32 %v1311_v4, %v1329_v17 }
 0x17b   : > { %v1372_v31 = vadd.f32 %v2479_v50, %v1347_v18  ;;  %v1389_v6 = vmax.f32 %v1371_v58, 0.0 }
 0x17c   : > { %v1081_v32 = vpop.f32.mrb[60].mxu0  ;;  %v1277_v33 = vpop.f32.mrb[60].mxu1 }
 0x17d   : > { %v1390_v45 = vmax.f32 %v1372_v31, 0.0  ;;  %v1330_v35 = vmax.f32 %v1081_v32, %v1277_v33  ;;  %v1931_v61 = vpop.f32.mrb[61].mxu0  ;;  %v1971_v62 = vpop.f32.mrb[61].mxu1 }
 0x17e   : > { %v1084_v63 = vpop.f32.mrb[62].mxu0  ;;  %v1280_v60 = vpop.f32.mrb[62].mxu1 }
 0x17f   : > { %v1752_v36 = vpack.c.bf16 %v1390_v45, %v1389_v6  ;;  %v1348_v38 = vmax.f32 %v2581_v37, %v1330_v35  ;;  %v1331_v0 = vmax.f32 %v1084_v63, %v1280_v60  ;;  %v1932_v2 = vpop.f32.mrb[63].mxu0  ;;  %v1972_v3 = vpop.f32.mrb[63].mxu1 }
 0x181   : > { %1773 = vst [vmem:[%s2492_s14 + $0x28] sm:$0xff] %v1752_v36   ;;  %v1373_v4 = vadd.f32 %v2479_v50, %v1348_v38  ;;  %v1349_v14 = vmax.f32 %v2582_v10, %v1331_v0 }
 0x183   : > { %v1374_v20 = vadd.f32 %v2479_v50, %v1349_v14  ;;  %v1391_v21 = vmax.f32 %v1373_v4, 0.0 }
 0x184   : > { %v1089_v34 = vpop.f32.mrb[64].mxu0  ;;  %v1285_v24 = vpop.f32.mrb[64].mxu1 }
 0x185   : > { %v1392_v41 = vmax.f32 %v1374_v20, 0.0  ;;  %v1332_v42 = vmax.f32 %v1089_v34, %v1285_v24  ;;  %v1935_v7 = vpop.f32.mrb[65].mxu0  ;;  %v1975_v8 = vpop.f32.mrb[65].mxu1 }
 0x186   : > { %v1092_v43 = vpop.f32.mrb[66].mxu0  ;;  %v1288_v22 = vpop.f32.mrb[66].mxu1 }
 0x187   : > { %v1757_v23 = vpack.c.bf16 %v1392_v41, %v1391_v21  ;;  %v1350_v25 = vmax.f32 %v2583_v9, %v1332_v42  ;;  %v1333_v46 = vmax.f32 %v1092_v43, %v1288_v22  ;;  %v1936_v15 = vpop.f32.mrb[67].mxu0  ;;  %v1976_v19 = vpop.f32.mrb[67].mxu1 }
 0x189   : > { %1774 = vst [vmem:[%s2492_s14 + $0x30] sm:$0xff] %v1757_v23   ;;  %v1375_v47 = vadd.f32 %v2479_v50, %v1350_v25  ;;  %v1351_v39 = vmax.f32 %v2584_v48, %v1333_v46 }
 0x18b   : > { %v1376_v49 = vadd.f32 %v2479_v50, %v1351_v39  ;;  %v1393_v28 = vmax.f32 %v1375_v47, 0.0 }
 0x18c   : > { %v1097_v26 = vpop.f32.mrb[68].mxu0  ;;  %v1293_v27 = vpop.f32.mrb[68].mxu1 }
 0x18d   : > { %v1394_v11 = vmax.f32 %v1376_v49, 0.0  ;;  %v1334_v12 = vmax.f32 %v1097_v26, %v1293_v27  ;;  %v1939_v29 = vpop.f32.mrb[69].mxu0  ;;  %v1979_v30 = vpop.f32.mrb[69].mxu1 }
 0x18e   : > { %v1100_v51 = vpop.f32.mrb[70].mxu0  ;;  %v1296_v52 = vpop.f32.mrb[70].mxu1 }
 0x18f   : > { %v1762_v53 = vpack.c.bf16 %v1394_v11, %v1393_v28  ;;  %v1352_v59 = vmax.f32 %v2585_v13, %v1334_v12  ;;  %v1335_v40 = vmax.f32 %v1100_v51, %v1296_v52  ;;  %v1940_v44 = vpop.f32.mrb[71].mxu0  ;;  %v1980_v16 = vpop.f32.mrb[71].mxu1 }
 0x191   : > { %1775 = vst [vmem:[%s2492_s14 + $0x38] sm:$0xff] %v1762_v53   ;;  %v1377_v17 = vadd.f32 %v2479_v50, %v1352_v59  ;;  %v1353_v57 = vmax.f32 %v2586_v56, %v1335_v40 }
 0x193   : > { %v1378_v58 = vadd.f32 %v2479_v50, %v1353_v57  ;;  %v1395_v18 = vmax.f32 %v1377_v17, 0.0 }
 0x195   : > { %v1396_v31 = vmax.f32 %v1378_v58, 0.0 }
 0x197   : > { %v1767_v32 = vpack.c.bf16 %v1396_v31, %v1395_v18 }
 0x199   : > { %1776 = vst [vmem:[%s2492_s14 + $0x40] sm:$0xff] %v1767_v32  }
 0x19a PF: > { %p10_p9 = scmp.ge.s32.totalorder %s2110_s16, 4   ;;  %s2587_s12 = smov %s2065_s13 }
 0x19b   : > { %s2588_s13 = smov %s2119_s19  ;;  %s2589_s14 = smov %s2110_s16 }
 0x19c   :  { %12 = sbr.rel (!%p10_p9) target bundleno = 2 (0x2), region = 111 }

// kernel: network_forward.4
= control target key start
LH: loop header
LB: loop body
LE: loop exit
PB: predicated region body
PF: predicated region fallthrough
CT: control target
= control target key end

     0   :  { %v845_v0 = vmov 0   ;;  %vm131_vm0 = vcmask 130048   ;;  %s1144_s1 = inlined_call_operand.vmem [shape: bf16[144,128], index: 1, kind: input, shape index: {}]   ;;  %s1145_s0 = inlined_call_operand.vmem [shape: bf16[4,64,144], index: 0, kind: input, shape index: {}]   ;;  %s1146_s2 = inlined_call_operand.vmem [shape: f32[1,128], index: 2, kind: input, shape index: {}]   ;;  %s1147_s3 = inlined_call_operand.vmem [shape: bf16[64,128], index: 3, kind: output, shape index: {}]  }
   0x1   :  { %144 = vmatprep.subr.bf16.mxu0 %v845_v0  ;;  %266 = vmatprep.subr.bf16.mxu1 %v845_v0  ;;  %v788_v1 = vld [vmem:[%s1144_s1] sm:$0xff]   ;;  %v789_v2 = vld [vmem:[%s1144_s1 + $0x8] sm:$0xff]   ;;  %v879_v3 = vld [vmem:[%s1144_s1 + $0x10] sm:$0xff]  }
   0x2   :  { %145 = vmatpush1.bf16.msra.mxu0 %v788_v1  ;;  %267 = vmatpush1.bf16.msra.mxu1 %v788_v1  ;;  %v886_v4 = vld [vmem:[%s1144_s1 + $0x18] sm:$0xff]   ;;  %v799_v5 = vld [vmem:[%s1145_s0 + $0x4] ss:$8 sps:$4 sm:$0xff]   ;;  %v923_v9 = vld [vmem:[%s1144_s1 + $0x30] sm:$0xff]  }
   0x3   :  { %146 = vmatprep.subr.bf16.mxu0 %v845_v0  ;;  %268 = vmatprep.subr.bf16.mxu1 %v845_v0  ;;  %v802_v6 = vld [vmem:[%s1145_s0 + $0x44] ss:$8 sps:$4 sm:$0xff]   ;;  %v932_v10 = vld [vmem:[%s1144_s1 + $0x38] sm:$0xff]   ;;  %v797_v12 = vld [vmem:[%s1145_s0] ss:$8 sps:$4 sm:$0xff]  }
   0x4   :  { %683 = vmatprep.mubr.msk.bf16.mxu0 %vm131_vm0, %v799_v5  ;;  %703 = vmatprep.mubr.msk.bf16.mxu1 %vm131_vm0, %v802_v6  ;;  %v905_v7 = vld [vmem:[%s1144_s1 + $0x20] sm:$0xff]   ;;  %v914_v8 = vld [vmem:[%s1144_s1 + $0x28] sm:$0xff]   ;;  %v803_v14 = vld [vmem:[%s1145_s0 + $0x14] ss:$8 sps:$4 sm:$0xff]  }
   0x5   :  { %v941_v11 = vld [vmem:[%s1144_s1 + $0x40] sm:$0xff]   ;;  %v805_v15 = vld [vmem:[%s1145_s0 + $0x54] ss:$8 sps:$4 sm:$0xff]   ;;  %v807_v16 = vld [vmem:[%s1145_s0 + $0x10] ss:$8 sps:$4 sm:$0xff]  }
   0x6   :  { %147 = vmatpush1.bf16.msra.mxu0 %v789_v2  ;;  %269 = vmatpush1.bf16.msra.mxu1 %v789_v2  ;;  %v800_v13 = vld [vmem:[%s1145_s0 + $0x40] ss:$8 sps:$4 sm:$0xff]   ;;  %v808_v17 = vld [vmem:[%s1145_s0 + $0x50] ss:$8 sps:$4 sm:$0xff]   ;;  %v809_v18 = vld [vmem:[%s1145_s0 + $0x24] ss:$8 sps:$4 sm:$0xff]  }
   0x7   :  { %148 = vmatprep.subr.bf16.mxu0 %v845_v0  ;;  %270 = vmatprep.subr.bf16.mxu1 %v845_v0  ;;  %v811_v19 = vld [vmem:[%s1145_s0 + $0x64] ss:$8 sps:$4 sm:$0xff]   ;;  %v813_v20 = vld [vmem:[%s1145_s0 + $0x20] ss:$8 sps:$4 sm:$0xff]   ;;  %v815_v22 = vld [vmem:[%s1145_s0 + $0x34] ss:$8 sps:$4 sm:$0xff]  }
   0x8   :  { %v814_v21 = vld [vmem:[%s1145_s0 + $0x60] ss:$8 sps:$4 sm:$0xff]   ;;  %v817_v23 = vld [vmem:[%s1145_s0 + $0x74] ss:$8 sps:$4 sm:$0xff]   ;;  %v819_v24 = vld [vmem:[%s1145_s0 + $0x30] ss:$8 sps:$4 sm:$0xff]  }
   0x9   :  { %v820_v25 = vld [vmem:[%s1145_s0 + $0x70] ss:$8 sps:$4 sm:$0xff]   ;;  %v823_v26 = vld [vmem:[%s1145_s0 + $0x84] ss:$8 sps:$4 sm:$0xff]   ;;  %v821_v28 = vld [vmem:[%s1145_s0 + $0x80] ss:$8 sps:$4 sm:$0xff]  }
   0xa   :  { %149 = vmatpush1.bf16.msra.mxu0 %v879_v3  ;;  %271 = vmatpush1.bf16.msra.mxu1 %v879_v3  ;;  %v826_v27 = vld [vmem:[%s1145_s0 + $0xc4] ss:$8 sps:$4 sm:$0xff]   ;;  %v824_v29 = vld [vmem:[%s1145_s0 + $0xc0] ss:$8 sps:$4 sm:$0xff]   ;;  %v827_v30 = vld [vmem:[%s1145_s0 + $0x94] ss:$8 sps:$4 sm:$0xff]  }
   0xb   :  { %150 = vmatprep.subr.bf16.mxu0 %v845_v0  ;;  %272 = vmatprep.subr.bf16.mxu1 %v845_v0  ;;  %v829_v31 = vld [vmem:[%s1145_s0 + $0xd4] ss:$8 sps:$4 sm:$0xff]   ;;  %v831_v32 = vld [vmem:[%s1145_s0 + $0x90] ss:$8 sps:$4 sm:$0xff]   ;;  %v833_v34 = vld [vmem:[%s1145_s0 + $0xa4] ss:$8 sps:$4 sm:$0xff]  }
   0xc   :  { %v832_v33 = vld [vmem:[%s1145_s0 + $0xd0] ss:$8 sps:$4 sm:$0xff]   ;;  %v835_v35 = vld [vmem:[%s1145_s0 + $0xe4] ss:$8 sps:$4 sm:$0xff]   ;;  %v837_v36 = vld [vmem:[%s1145_s0 + $0xa0] ss:$8 sps:$4 sm:$0xff]  }
   0xd   :  { %v838_v37 = vld [vmem:[%s1145_s0 + $0xe0] ss:$8 sps:$4 sm:$0xff]   ;;  %v839_v38 = vld [vmem:[%s1145_s0 + $0xb4] ss:$8 sps:$4 sm:$0xff]   ;;  %v843_v40 = vld [vmem:[%s1145_s0 + $0xb0] ss:$8 sps:$4 sm:$0xff]  }
   0xe   :  { %151 = vmatpush1.bf16.msra.mxu0 %v886_v4  ;;  %273 = vmatpush1.bf16.msra.mxu1 %v886_v4  ;;  %v841_v39 = vld [vmem:[%s1145_s0 + $0xf4] ss:$8 sps:$4 sm:$0xff]   ;;  %v844_v41 = vld [vmem:[%s1145_s0 + $0xf0] ss:$8 sps:$4 sm:$0xff]  }
   0xf   :  { %152 = vmatprep.subr.bf16.mxu0 %v845_v0  ;;  %274 = vmatprep.subr.bf16.mxu1 %v845_v0 }
  0x12   :  { %153 = vmatpush1.bf16.msra.mxu0 %v905_v7  ;;  %275 = vmatpush1.bf16.msra.mxu1 %v905_v7 }
  0x13   :  { %154 = vmatprep.subr.bf16.mxu0 %v845_v0  ;;  %276 = vmatprep.subr.bf16.mxu1 %v845_v0 }
  0x16   :  { %155 = vmatpush1.bf16.msra.mxu0 %v914_v8  ;;  %277 = vmatpush1.bf16.msra.mxu1 %v914_v8 }
  0x17   :  { %156 = vmatprep.subr.bf16.mxu0 %v845_v0  ;;  %278 = vmatprep.subr.bf16.mxu1 %v845_v0 }
  0x1a   :  { %157 = vmatpush1.bf16.msra.mxu0 %v923_v9  ;;  %279 = vmatpush1.bf16.msra.mxu1 %v923_v9 }
  0x1b   :  { %158 = vmatprep.subr.bf16.mxu0 %v845_v0  ;;  %280 = vmatprep.subr.bf16.mxu1 %v845_v0 }
  0x1e   :  { %159 = vmatpush1.bf16.msra.mxu0 %v932_v10  ;;  %281 = vmatpush1.bf16.msra.mxu1 %v932_v10 }
  0x1f   :  { %160 = vmatprep.subr.bf16.mxu0 %v845_v0  ;;  %282 = vmatprep.subr.bf16.mxu1 %v845_v0 }
  0x22   :  { %161 = vmatpush1.bf16.msra.mxu0 %v941_v11  ;;  %283 = vmatpush1.bf16.msra.mxu1 %v941_v11 }
  0x23   :  { %388 = vmatprep.subr.bf16.mxu0 %v845_v0  ;;  %510 = vmatprep.subr.bf16.mxu1 %v845_v0 }
  0x25   :  { %177 = vmatmul.mubr.bf16.vlgmr.msra.gmra.mrb[0].mxu0 %v797_v12  ;;  %299 = vmatmul.mubr.bf16.vlgmr.msra.gmra.mrb[0].mxu1 %v800_v13 }
  0x26   :  { %389 = vmatpush1.bf16.msra.mxu0 %v788_v1  ;;  %511 = vmatpush1.bf16.msra.mxu1 %v788_v1 }
  0x27   :  { %390 = vmatprep.subr.bf16.mxu0 %v845_v0  ;;  %512 = vmatprep.subr.bf16.mxu1 %v845_v0 }
  0x28   :  { %684 = vmatprep.mubr.msk.bf16.mxu0 %vm131_vm0, %v803_v14  ;;  %704 = vmatprep.mubr.msk.bf16.mxu1 %vm131_vm0, %v805_v15 }
  0x2a   :  { %391 = vmatpush1.bf16.msra.mxu0 %v789_v2  ;;  %513 = vmatpush1.bf16.msra.mxu1 %v789_v2 }
  0x2b   :  { %392 = vmatprep.subr.bf16.mxu0 %v845_v0  ;;  %514 = vmatprep.subr.bf16.mxu1 %v845_v0 }
  0x2d   :  { %185 = vmatmul.mubr.bf16.gmra.mrb[4].mxu0 %v807_v16  ;;  %307 = vmatmul.mubr.bf16.gmra.mrb[4].mxu1 %v808_v17 }
  0x2e   :  { %393 = vmatpush1.bf16.msra.mxu0 %v879_v3  ;;  %515 = vmatpush1.bf16.msra.mxu1 %v879_v3 }
  0x2f   :  { %394 = vmatprep.subr.bf16.mxu0 %v845_v0  ;;  %516 = vmatprep.subr.bf16.mxu1 %v845_v0 }
  0x30   :  { %685 = vmatprep.mubr.msk.bf16.mxu0 %vm131_vm0, %v809_v18  ;;  %705 = vmatprep.mubr.msk.bf16.mxu1 %vm131_vm0, %v811_v19 }
  0x32   :  { %395 = vmatpush1.bf16.msra.mxu0 %v886_v4  ;;  %517 = vmatpush1.bf16.msra.mxu1 %v886_v4 }
  0x33   :  { %396 = vmatprep.subr.bf16.mxu0 %v845_v0  ;;  %518 = vmatprep.subr.bf16.mxu1 %v845_v0 }
  0x35   :  { %193 = vmatmul.mubr.bf16.gmra.mrb[8].mxu0 %v813_v20  ;;  %315 = vmatmul.mubr.bf16.gmra.mrb[8].mxu1 %v814_v21 }
  0x36   :  { %397 = vmatpush1.bf16.msra.mxu0 %v905_v7  ;;  %519 = vmatpush1.bf16.msra.mxu1 %v905_v7 }
  0x37   :  { %398 = vmatprep.subr.bf16.mxu0 %v845_v0  ;;  %520 = vmatprep.subr.bf16.mxu1 %v845_v0 }
  0x38   :  { %686 = vmatprep.mubr.msk.bf16.mxu0 %vm131_vm0, %v815_v22  ;;  %706 = vmatprep.mubr.msk.bf16.mxu1 %vm131_vm0, %v817_v23  ;;  %v1110_v23 = vld [vmem:[%s1146_s2] ss:$0 sm:$0xff] }
  0x3a   :  { %399 = vmatpush1.bf16.msra.mxu0 %v914_v8  ;;  %521 = vmatpush1.bf16.msra.mxu1 %v914_v8 }
  0x3b   :  { %400 = vmatprep.subr.bf16.mxu0 %v845_v0  ;;  %522 = vmatprep.subr.bf16.mxu1 %v845_v0 }
  0x3d   :  { %201 = vmatmul.mubr.bf16.gmra.mrb[12].mxu0 %v819_v24  ;;  %323 = vmatmul.mubr.bf16.gmra.mrb[12].mxu1 %v820_v25 }
  0x3e   :  { %401 = vmatpush1.bf16.msra.mxu0 %v923_v9  ;;  %523 = vmatpush1.bf16.msra.mxu1 %v923_v9 }
  0x3f   :  { %402 = vmatprep.subr.bf16.mxu0 %v845_v0  ;;  %524 = vmatprep.subr.bf16.mxu1 %v845_v0 }
  0x40   :  { %723 = vmatprep.mubr.msk.bf16.mxu0 %vm131_vm0, %v823_v26  ;;  %743 = vmatprep.mubr.msk.bf16.mxu1 %vm131_vm0, %v826_v27 }
  0x42   :  { %403 = vmatpush1.bf16.msra.mxu0 %v932_v10  ;;  %525 = vmatpush1.bf16.msra.mxu1 %v932_v10 }
  0x43   :  { %404 = vmatprep.subr.bf16.mxu0 %v845_v0  ;;  %526 = vmatprep.subr.bf16.mxu1 %v845_v0 }
  0x46   :  { %405 = vmatpush1.bf16.msra.mxu0 %v941_v11  ;;  %527 = vmatpush1.bf16.msra.mxu1 %v941_v11 }
  0x49   :  { %421 = vmatmul.mubr.bf16.vlgmr.msra.gmra.mrb[16].mxu0 %v821_v28  ;;  %543 = vmatmul.mubr.bf16.vlgmr.msra.gmra.mrb[16].mxu1 %v824_v29 }
  0x4a   :  { %724 = vmatprep.mubr.msk.bf16.mxu0 %vm131_vm0, %v827_v30  ;;  %744 = vmatprep.mubr.msk.bf16.mxu1 %vm131_vm0, %v829_v31 }
  0x51   :  { %429 = vmatmul.mubr.bf16.gmra.mrb[20].mxu0 %v831_v32  ;;  %551 = vmatmul.mubr.bf16.gmra.mrb[20].mxu1 %v832_v33 }
  0x52   :  { %725 = vmatprep.mubr.msk.bf16.mxu0 %vm131_vm0, %v833_v34  ;;  %745 = vmatprep.mubr.msk.bf16.mxu1 %vm131_vm0, %v835_v35 }
  0x59   :  { %437 = vmatmul.mubr.bf16.gmra.mrb[24].mxu0 %v837_v36  ;;  %559 = vmatmul.mubr.bf16.gmra.mrb[24].mxu1 %v838_v37 }
  0x5a   :  { %726 = vmatprep.mubr.msk.bf16.mxu0 %vm131_vm0, %v839_v38  ;;  %746 = vmatprep.mubr.msk.bf16.mxu1 %vm131_vm0, %v841_v39 }
  0x61   :  { %445 = vmatmul.mubr.bf16.gmra.mrb[28].mxu0 %v843_v40  ;;  %567 = vmatmul.mubr.bf16.gmra.mrb[28].mxu1 %v844_v41 }
  0xf8   :  { %v178_v42 = vpop.f32.mrb[0].mxu0  ;;  %v300_v43 = vpop.f32.mrb[0].mxu1 }
  0xf9   :  { %v575_v44 = vmax.f32 %v178_v42, %v300_v43  ;;  %v180_v45 = vpop.f32.mrb[1].mxu0  ;;  %v302_v46 = vpop.f32.mrb[1].mxu1 }
  0xfa   :  { %v181_v47 = vpop.f32.mrb[2].mxu0  ;;  %v303_v48 = vpop.f32.mrb[2].mxu1 }
  0xfb   :  { %v576_v49 = vmax.f32 %v181_v47, %v303_v48  ;;  %v183_v50 = vpop.f32.mrb[3].mxu0  ;;  %v305_v51 = vpop.f32.mrb[3].mxu1 }
 0x100   :  { %v186_v52 = vpop.f32.mrb[4].mxu0  ;;  %v308_v53 = vpop.f32.mrb[4].mxu1 }
 0x101   :  { %v577_v54 = vmax.f32 %v186_v52, %v308_v53  ;;  %v188_v55 = vpop.f32.mrb[5].mxu0  ;;  %v310_v56 = vpop.f32.mrb[5].mxu1 }
 0x102   :  { %v189_v57 = vpop.f32.mrb[6].mxu0  ;;  %v311_v58 = vpop.f32.mrb[6].mxu1 }
 0x103   :  { %v578_v59 = vmax.f32 %v189_v57, %v311_v58  ;;  %v191_v60 = vpop.f32.mrb[7].mxu0  ;;  %v313_v61 = vpop.f32.mrb[7].mxu1 }
 0x108   :  { %v1083_v62 = vpop.f32.mrb[8].mxu0  ;;  %v1085_v63 = vpop.f32.mrb[8].mxu1 }
 0x109   :  { %v579_v0 = vmax.f32 %v1083_v62, %v1085_v63  ;;  %v196_v1 = vpop.f32.mrb[9].mxu0  ;;  %v318_v2 = vpop.f32.mrb[9].mxu1 }
 0x10a   :  { %v1089_v3 = vpop.f32.mrb[10].mxu0  ;;  %v1091_v4 = vpop.f32.mrb[10].mxu1 }
 0x10b   :  { %v580_v5 = vmax.f32 %v1089_v3, %v1091_v4  ;;  %v199_v6 = vpop.f32.mrb[11].mxu0  ;;  %v321_v7 = vpop.f32.mrb[11].mxu1 }
 0x110   :  { %v1095_v8 = vpop.f32.mrb[12].mxu0  ;;  %v1097_v9 = vpop.f32.mrb[12].mxu1 }
 0x111   :  { %v581_v10 = vmax.f32 %v1095_v8, %v1097_v9  ;;  %v204_v11 = vpop.f32.mrb[13].mxu0  ;;  %v326_v12 = vpop.f32.mrb[13].mxu1 }
 0x112   :  { %v1101_v13 = vpop.f32.mrb[14].mxu0  ;;  %v1103_v14 = vpop.f32.mrb[14].mxu1 }
 0x113   :  { %v582_v15 = vmax.f32 %v1101_v13, %v1103_v14  ;;  %v207_v16 = vpop.f32.mrb[15].mxu0  ;;  %v329_v17 = vpop.f32.mrb[15].mxu1 }
 0x11c   :  { %v422_v18 = vpop.f32.mrb[16].mxu0  ;;  %v544_v19 = vpop.f32.mrb[16].mxu1 }
 0x11d   :  { %v583_v20 = vmax.f32 %v422_v18, %v544_v19  ;;  %v424_v21 = vpop.f32.mrb[17].mxu0  ;;  %v546_v22 = vpop.f32.mrb[17].mxu1 }
 0x11e   :  { %v425_v24 = vpop.f32.mrb[18].mxu0  ;;  %v547_v25 = vpop.f32.mrb[18].mxu1 }
 0x11f   :  { %v591_v26 = vmax.f32 %v575_v44, %v583_v20  ;;  %v584_v27 = vmax.f32 %v425_v24, %v547_v25  ;;  %v427_v28 = vpop.f32.mrb[19].mxu0  ;;  %v549_v29 = vpop.f32.mrb[19].mxu1 }
 0x121   :  { %v606_v30 = vadd.f32 %v1110_v23, %v591_v26  ;;  %v592_v31 = vmax.f32 %v576_v49, %v584_v27 }
 0x123   :  { %v607_v32 = vadd.f32 %v1110_v23, %v592_v31  ;;  %v614_v35 = vmax.f32 %v606_v30, 0.0 }
 0x124   :  { %v430_v33 = vpop.f32.mrb[20].mxu0  ;;  %v552_v34 = vpop.f32.mrb[20].mxu1 }
 0x125   :  { %v615_v36 = vmax.f32 %v607_v32, 0.0  ;;  %v585_v37 = vmax.f32 %v430_v33, %v552_v34  ;;  %v432_v38 = vpop.f32.mrb[21].mxu0  ;;  %v554_v39 = vpop.f32.mrb[21].mxu1 }
 0x126   :  { %v433_v40 = vpop.f32.mrb[22].mxu0  ;;  %v555_v41 = vpop.f32.mrb[22].mxu1 }
 0x127   :  { %v767_v42 = vpack.c.bf16 %v615_v36, %v614_v35  ;;  %v593_v43 = vmax.f32 %v577_v54, %v585_v37  ;;  %v586_v44 = vmax.f32 %v433_v40, %v555_v41  ;;  %v435_v45 = vpop.f32.mrb[23].mxu0  ;;  %v557_v46 = vpop.f32.mrb[23].mxu1 }
 0x129   :  { %768 = vst [vmem:[%s1147_s3] sm:$0xff] %v767_v42   ;;  %v608_v47 = vadd.f32 %v1110_v23, %v593_v43  ;;  %v594_v48 = vmax.f32 %v578_v59, %v586_v44 }
 0x12b   :  { %v609_v49 = vadd.f32 %v1110_v23, %v594_v48  ;;  %v616_v52 = vmax.f32 %v608_v47, 0.0 }
 0x12c   :  { %v438_v50 = vpop.f32.mrb[24].mxu0  ;;  %v560_v51 = vpop.f32.mrb[24].mxu1 }
 0x12d   :  { %v617_v53 = vmax.f32 %v609_v49, 0.0  ;;  %v587_v55 = vmax.f32 %v438_v50, %v560_v51  ;;  %v440_v56 = vpop.f32.mrb[25].mxu0  ;;  %v562_v57 = vpop.f32.mrb[25].mxu1 }
 0x12e   :  { %v441_v54 = vpop.f32.mrb[26].mxu0  ;;  %v563_v58 = vpop.f32.mrb[26].mxu1 }
 0x12f   :  { %v772_v60 = vpack.c.bf16 %v617_v53, %v616_v52  ;;  %v595_v61 = vmax.f32 %v579_v0, %v587_v55  ;;  %v588_v1 = vmax.f32 %v441_v54, %v563_v58  ;;  %v443_v2 = vpop.f32.mrb[27].mxu0  ;;  %v565_v6 = vpop.f32.mrb[27].mxu1 }
 0x131   :  { %784 = vst [vmem:[%s1147_s3 + $0x8] sm:$0xff] %v772_v60   ;;  %v610_v59 = vadd.f32 %v1110_v23, %v595_v61  ;;  %v596_v7 = vmax.f32 %v580_v5, %v588_v1 }
 0x133   :  { %v611_v11 = vadd.f32 %v1110_v23, %v596_v7  ;;  %v618_v17 = vmax.f32 %v610_v59, 0.0 }
 0x134   :  { %v446_v12 = vpop.f32.mrb[28].mxu0  ;;  %v568_v16 = vpop.f32.mrb[28].mxu1 }
 0x135   :  { %v619_v62 = vmax.f32 %v611_v11, 0.0  ;;  %v589_v63 = vmax.f32 %v446_v12, %v568_v16  ;;  %v448_v0 = vpop.f32.mrb[29].mxu0  ;;  %v570_v18 = vpop.f32.mrb[29].mxu1 }
 0x136   :  { %v449_v19 = vpop.f32.mrb[30].mxu0  ;;  %v571_v20 = vpop.f32.mrb[30].mxu1 }
 0x137   :  { %v777_v21 = vpack.c.bf16 %v619_v62, %v618_v17  ;;  %v597_v22 = vmax.f32 %v581_v10, %v589_v63  ;;  %v590_v24 = vmax.f32 %v449_v19, %v571_v20  ;;  %v451_v25 = vpop.f32.mrb[31].mxu0  ;;  %v573_v3 = vpop.f32.mrb[31].mxu1 }
 0x139   :  { %785 = vst [vmem:[%s1147_s3 + $0x10] sm:$0xff] %v777_v21   ;;  %v612_v4 = vadd.f32 %v1110_v23, %v597_v22  ;;  %v598_v5 = vmax.f32 %v582_v15, %v590_v24 }
 0x13b   :  { %v613_v26 = vadd.f32 %v1110_v23, %v598_v5  ;;  %v620_v27 = vmax.f32 %v612_v4, 0.0 }
 0x13d   :  { %v621_v28 = vmax.f32 %v613_v26, 0.0 }
 0x13f   :  { %v782_v29 = vpack.c.bf16 %v621_v28, %v620_v27 }
 0x141   :  { %786 = vst [vmem:[%s1147_s3 + $0x18] sm:$0xff] %v782_v29  }

// kernel: network_forward.5
= control target key start
LH: loop header
LB: loop body
LE: loop exit
PB: predicated region body
PF: predicated region fallthrough
CT: control target
= control target key end

     0   :  { %v1141_v0 = vmov 0.0   ;;  %vm1142_vm0 = vmmov 0   ;;  %vm181_vm1 = vcmask 261120   ;;  %s1463_s1 = inlined_call_operand.vmem [shape: bf16[288,128], index: 1, kind: input, shape index: {}]   ;;  %s1464_s0 = inlined_call_operand.vmem [shape: bf16[4,16,288], index: 0, kind: input, shape index: {}]   ;;  %s1465_s3 = inlined_call_operand.vmem [shape: bf16[256,128], index: 3, kind: input, shape index: {}]   ;;  %s1466_s2 = inlined_call_operand.vmem [shape: f32[8,128], index: 2, kind: input, shape index: {}]   ;;  %s1467_s4 = inlined_call_operand.vmem [shape: f32[16,128], index: 4, kind: output, shape index: {}]  }
   0x1   :  { %1017 = vmatprep.subr.bf16.mxu1 %v1141_v0  ;;  %v1172_v1 = vld [vmem:[%s1463_s1 + $0x40] sm:$0xff]   ;;  %1021 = vmatprep.mubr.msk.bf16.mxu1 %vm1142_vm0, %v1141_v0  ;;  %v1191_v4 = vld [vmem:[%s1463_s1 + $0x48] sm:$0xff]   ;;  %v1213_v8 = vld [vmem:[%s1463_s1 + $0x50] sm:$0xff]  }
   0x2   :  { %v1179_v2 = vld [vmem:[%s1463_s1 + $0x80] sm:$0xff]   ;;  %899 = vmatprep.subr.bf16.mxu0 %v1172_v1  ;;  %v1198_v5 = vld [vmem:[%s1463_s1 + $0x88] sm:$0xff]   ;;  %v1220_v9 = vld [vmem:[%s1463_s1 + $0x10] sm:$0xff]  }
   0x3   :  { %v1185_v3 = vld [vmem:[%s1463_s1] sm:$0xff]   ;;  %1018 = vmatpush3.bf16.msra.mxu1 %v1179_v2  ;;  %v1204_v6 = vld [vmem:[%s1463_s1 + $0x8] sm:$0xff]   ;;  %v1226_v10 = vld [vmem:[%s1463_s1 + $0x58] sm:$0xff]  }
   0x4   :  { %900 = vmatpush3.bf16.msra.mxu0 %v1185_v3  ;;  %1019 = vmatprep.subr.bf16.mxu1 %v1141_v0  ;;  %v1097_v7 = vld [vmem:[%s1464_s0 + $0x8] ss:$12 sps:$4 sm:$0xff]   ;;  %v1235_v11 = vld [vmem:[%s1463_s1 + $0x18] sm:$0xff]   ;;  %v1241_v12 = vld [vmem:[%s1463_s1 + $0x60] sm:$0xff]  }
   0x5   :  { %901 = vmatprep.subr.bf16.mxu0 %v1191_v4  ;;  %v1249_v13 = vld [vmem:[%s1463_s1 + $0x20] sm:$0xff]   ;;  %v1255_v14 = vld [vmem:[%s1463_s1 + $0x68] sm:$0xff]   ;;  %v1272_v17 = vld [vmem:[%s1463_s1 + $0x70] sm:$0xff]  }
   0x6   :  { %v1261_v15 = vld [vmem:[%s1463_s1 + $0x28] sm:$0xff]   ;;  %v1112_v16 = vld [vmem:[%s1464_s0 + $0x4] ss:$12 sps:$4 sm:$0xff]   ;;  %v1289_v20 = vld [vmem:[%s1463_s1 + $0x78] sm:$0xff]  }
   0x7   :  { %1020 = vmatpush3.bf16.msra.mxu1 %v1198_v5  ;;  %v1115_v18 = vld [vmem:[%s1464_s0 + $0x1c] ss:$12 sps:$4 sm:$0xff]   ;;  %217 = vmatprep.mubr.bf16.mxu0 %v1112_v16  ;;  %v1283_v19 = vld [vmem:[%s1463_s1 + $0x30] sm:$0xff]   ;;  %v1110_v22 = vld [vmem:[%s1464_s0] ss:$12 sps:$4 sm:$0xff]  }
   0x8   :  { %902 = vmatpush3.bf16.msra.mxu0 %v1204_v6  ;;  %924 = vmatprep.subr.bf16.mxu1 %v1172_v1  ;;  %v1297_v21 = vld [vmem:[%s1463_s1 + $0x38] sm:$0xff]   ;;  %v1116_v24 = vld [vmem:[%s1464_s0 + $0x20] ss:$12 sps:$4 sm:$0xff]   ;;  %v1121_v29 = vld [vmem:[%s1464_s0 + $0x48] ss:$12 sps:$4 sm:$0xff]  }
   0x9   :  { %903 = vmatprep.subr.bf16.mxu0 %v1213_v8  ;;  %v1113_v23 = vld [vmem:[%s1464_s0 + $0x18] ss:$12 sps:$4 sm:$0xff]   ;;  %v1120_v25 = vld [vmem:[%s1464_s0 + $0x34] ss:$12 sps:$4 sm:$0xff]   ;;  %v1118_v28 = vld [vmem:[%s1464_s0 + $0x30] ss:$12 sps:$4 sm:$0xff]  }
   0xa   :  { %1022 = vmatmul.mubr.msk.bf16.vlgmr.msra.gmra.mrb[0].mxu1 %vm181_vm1, %v1097_v7  ;;  %v1117_v26 = vld [vmem:[%s1464_s0 + $0x38] ss:$12 sps:$4 sm:$0xff]   ;;  %v1124_v30 = vld [vmem:[%s1464_s0 + $0x50] ss:$12 sps:$4 sm:$0xff]   ;;  %v1126_v32 = vld [vmem:[%s1465_s3 + $0x8] sm:$0xff]  }
   0xb   :  { %925 = vmatpush3.bf16.msra.mxu1 %v1185_v3  ;;  %322 = vmatprep.mubr.bf16.mxu1 %v1115_v18  ;;  %v1123_v27 = vld [vmem:[%s1464_s0 + $0x4c] ss:$12 sps:$4 sm:$0xff]   ;;  %v1125_v31 = vld [vmem:[%s1465_s3] sm:$0xff]   ;;  %v1127_v33 = vld [vmem:[%s1465_s3 + $0x10] sm:$0xff]  }
   0xc   :  { %904 = vmatpush3.bf16.msra.mxu0 %v1220_v9  ;;  %926 = vmatprep.subr.bf16.mxu1 %v1191_v4  ;;  %v1128_v34 = vld [vmem:[%s1465_s3 + $0x18] sm:$0xff]   ;;  %v1129_v35 = vld [vmem:[%s1465_s3 + $0x20] sm:$0xff]   ;;  %v1130_v36 = vld [vmem:[%s1465_s3 + $0x28] sm:$0xff]  }
   0xd   :  { %905 = vmatprep.subr.bf16.mxu0 %v1226_v10  ;;  %v1131_v37 = vld [vmem:[%s1465_s3 + $0x30] sm:$0xff]   ;;  %v1132_v38 = vld [vmem:[%s1465_s3 + $0x38] sm:$0xff]   ;;  %v1133_v39 = vld [vmem:[%s1465_s3 + $0x40] sm:$0xff]  }
   0xe   :  { %v1134_v40 = vld [vmem:[%s1465_s3 + $0x48] sm:$0xff]   ;;  %v1135_v41 = vld [vmem:[%s1465_s3 + $0x50] sm:$0xff]   ;;  %v1136_v42 = vld [vmem:[%s1465_s3 + $0x58] sm:$0xff]  }
   0xf   :  { %927 = vmatpush3.bf16.msra.mxu1 %v1204_v6  ;;  %v1137_v43 = vld [vmem:[%s1465_s3 + $0x60] sm:$0xff]   ;;  %v1138_v44 = vld [vmem:[%s1465_s3 + $0x68] sm:$0xff]  }
  0x10   :  { %906 = vmatpush3.bf16.msra.mxu0 %v1235_v11  ;;  %928 = vmatprep.subr.bf16.mxu1 %v1213_v8 }
  0x11   :  { %907 = vmatprep.subr.bf16.mxu0 %v1241_v12 }
  0x13   :  { %929 = vmatpush3.bf16.msra.mxu1 %v1220_v9 }
  0x14   :  { %908 = vmatpush3.bf16.msra.mxu0 %v1249_v13  ;;  %930 = vmatprep.subr.bf16.mxu1 %v1226_v10 }
  0x15   :  { %909 = vmatprep.subr.bf16.mxu0 %v1255_v14 }
  0x17   :  { %931 = vmatpush3.bf16.msra.mxu1 %v1235_v11 }
  0x18   :  { %910 = vmatpush3.bf16.msra.mxu0 %v1261_v15  ;;  %932 = vmatprep.subr.bf16.mxu1 %v1241_v12 }
  0x19   :  { %911 = vmatprep.subr.bf16.mxu0 %v1272_v17 }
  0x1b   :  { %933 = vmatpush3.bf16.msra.mxu1 %v1249_v13 }
  0x1c   :  { %912 = vmatpush3.bf16.msra.mxu0 %v1283_v19  ;;  %934 = vmatprep.subr.bf16.mxu1 %v1255_v14 }
  0x1d   :  { %913 = vmatprep.subr.bf16.mxu0 %v1289_v20 }
  0x1f   :  { %935 = vmatpush3.bf16.msra.mxu1 %v1261_v15 }
  0x20   :  { %914 = vmatpush3.bf16.msra.mxu0 %v1297_v21  ;;  %936 = vmatprep.subr.bf16.mxu1 %v1272_v17 }
  0x21   :  { %1025 = vmatprep.subr.bf16.mxu0 %v1141_v0 }
  0x23   :  { %218 = vmatmul.mubr.bf16.vlgmr.msra.gmra.mrb[0].mxu0 %v1110_v22  ;;  %937 = vmatpush3.bf16.msra.mxu1 %v1283_v19 }
  0x24   :  { %1026 = vmatpush3.bf16.msra.mxu0 %v1179_v2  ;;  %938 = vmatprep.subr.bf16.mxu1 %v1289_v20 }
  0x25   :  { %1027 = vmatprep.subr.bf16.mxu0 %v1141_v0  ;;  %1029 = vmatprep.mubr.msk.bf16.mxu0 %vm1142_vm0, %v1141_v0 }
  0x27   :  { %939 = vmatpush3.bf16.msra.mxu1 %v1297_v21 }
  0x28   :  { %1028 = vmatpush3.bf16.msra.mxu0 %v1198_v5  ;;  %1033 = vmatprep.subr.bf16.mxu1 %v1141_v0 }
  0x29   :  { %949 = vmatprep.subr.bf16.mxu0 %v1172_v1 }
  0x2a   :  { %323 = vmatmul.mubr.bf16.vlgmr.msra.gmra.mrb[4].mxu1 %v1113_v23 }
  0x2b   :  { %1030 = vmatmul.mubr.msk.bf16.vlgmr.msra.gmra.mrb[4].mxu0 %vm181_vm1, %v1116_v24  ;;  %1034 = vmatpush3.bf16.msra.mxu1 %v1179_v2 }
  0x2c   :  { %950 = vmatpush3.bf16.msra.mxu0 %v1185_v3  ;;  %1035 = vmatprep.subr.bf16.mxu1 %v1141_v0 }
  0x2d   :  { %951 = vmatprep.subr.bf16.mxu0 %v1191_v4  ;;  %1037 = vmatprep.mubr.msk.bf16.mxu1 %vm1142_vm0, %v1141_v0 }
  0x2e   :  { %427 = vmatprep.mubr.bf16.mxu0 %v1120_v25 }
  0x2f   :  { %1036 = vmatpush3.bf16.msra.mxu1 %v1198_v5 }
  0x30   :  { %952 = vmatpush3.bf16.msra.mxu0 %v1204_v6  ;;  %974 = vmatprep.subr.bf16.mxu1 %v1172_v1 }
  0x31   :  { %953 = vmatprep.subr.bf16.mxu0 %v1213_v8 }
  0x32   :  { %1038 = vmatmul.mubr.msk.bf16.vlgmr.msra.gmra.mrb[8].mxu1 %vm181_vm1, %v1117_v26 }
  0x33   :  { %975 = vmatpush3.bf16.msra.mxu1 %v1185_v3  ;;  %532 = vmatprep.mubr.bf16.mxu1 %v1123_v27 }
  0x34   :  { %954 = vmatpush3.bf16.msra.mxu0 %v1220_v9  ;;  %976 = vmatprep.subr.bf16.mxu1 %v1191_v4 }
  0x35   :  { %955 = vmatprep.subr.bf16.mxu0 %v1226_v10 }
  0x37   :  { %977 = vmatpush3.bf16.msra.mxu1 %v1204_v6 }
  0x38   :  { %956 = vmatpush3.bf16.msra.mxu0 %v1235_v11  ;;  %978 = vmatprep.subr.bf16.mxu1 %v1213_v8 }
  0x39   :  { %957 = vmatprep.subr.bf16.mxu0 %v1241_v12 }
  0x3b   :  { %979 = vmatpush3.bf16.msra.mxu1 %v1220_v9 }
  0x3c   :  { %958 = vmatpush3.bf16.msra.mxu0 %v1249_v13  ;;  %980 = vmatprep.subr.bf16.mxu1 %v1226_v10 }
  0x3d   :  { %959 = vmatprep.subr.bf16.mxu0 %v1255_v14 }
  0x3f   :  { %981 = vmatpush3.bf16.msra.mxu1 %v1235_v11 }
  0x40   :  { %960 = vmatpush3.bf16.msra.mxu0 %v1261_v15  ;;  %982 = vmatprep.subr.bf16.mxu1 %v1241_v12 }
  0x41   :  { %961 = vmatprep.subr.bf16.mxu0 %v1272_v17 }
  0x43   :  { %983 = vmatpush3.bf16.msra.mxu1 %v1249_v13 }
  0x44   :  { %962 = vmatpush3.bf16.msra.mxu0 %v1283_v19  ;;  %984 = vmatprep.subr.bf16.mxu1 %v1255_v14  ;;  %v621_v14 = vlaneseq }
  0x45   :  { %963 = vmatprep.subr.bf16.mxu0 %v1289_v20 }
  0x47   :  { %985 = vmatpush3.bf16.msra.mxu1 %v1261_v15 }
  0x48   :  { %964 = vmatpush3.bf16.msra.mxu0 %v1297_v21  ;;  %986 = vmatprep.subr.bf16.mxu1 %v1272_v17 }
  0x49   :  { %1041 = vmatprep.subr.bf16.mxu0 %v1141_v0 }
  0x4b   :  { %428 = vmatmul.mubr.bf16.vlgmr.msra.gmra.mrb[8].mxu0 %v1118_v28  ;;  %987 = vmatpush3.bf16.msra.mxu1 %v1283_v19 }
  0x4c   :  { %1042 = vmatpush3.bf16.msra.mxu0 %v1179_v2  ;;  %988 = vmatprep.subr.bf16.mxu1 %v1289_v20  ;;  %v622_v20 = vshrl.u32 %v621_v14, 7 }
  0x4d   :  { %1043 = vmatprep.subr.bf16.mxu0 %v1141_v0  ;;  %1045 = vmatprep.mubr.msk.bf16.mxu0 %vm1142_vm0, %v1141_v0 }
  0x4e   :  { %v623_v26 = vsub.s32 0, %v622_v20 }
  0x4f   :  { %989 = vmatpush3.bf16.msra.mxu1 %v1297_v21 }
  0x50   :  { %1044 = vmatpush3.bf16.msra.mxu0 %v1198_v5  ;;  %1069 = vmatprep.subr.bf16.mxu1 %v1141_v0 }
  0x51   :  { %1049 = vmatprep.subr.bf16.mxu0 %v1141_v0 }
  0x52   :  { %533 = vmatmul.mubr.bf16.vlgmr.msra.gmra.mrb[12].mxu1 %v1121_v29  ;;  %v588_v29 = vld [vmem:[%s1466_s2] sm:$0xff] }
  0x53   :  { %1046 = vmatmul.mubr.msk.bf16.vlgmr.msra.gmra.mrb[12].mxu0 %vm181_vm1, %v1124_v30  ;;  %1085 = vmatprep.mubr.msk.bf16.mxu1 %vm1142_vm0, %v1141_v0 }
  0x54   :  { %1065 = vmatprep.mubr.msk.bf16.mxu0 %vm1142_vm0, %v1141_v0  ;;  %1050 = vmatpush3.bf16.msra.mxu0 %v1125_v31 }
  0x55   :  { %1051 = vmatprep.subr.bf16.mxu0 %v1141_v0  ;;  %1070 = vmatpush3.bf16.msra.mxu1 %v1133_v39 }
  0x56   :  { %1071 = vmatprep.subr.bf16.mxu1 %v1141_v0 }
  0x58   :  { %1052 = vmatpush3.bf16.msra.mxu0 %v1126_v32 }
  0x59   :  { %1053 = vmatprep.subr.bf16.mxu0 %v1141_v0  ;;  %1072 = vmatpush3.bf16.msra.mxu1 %v1134_v40 }
  0x5a   :  { %1073 = vmatprep.subr.bf16.mxu1 %v1141_v0 }
  0x5c   :  { %1054 = vmatpush3.bf16.msra.mxu0 %v1127_v33 }
  0x5d   :  { %1055 = vmatprep.subr.bf16.mxu0 %v1141_v0  ;;  %1074 = vmatpush3.bf16.msra.mxu1 %v1135_v41 }
  0x5e   :  { %1075 = vmatprep.subr.bf16.mxu1 %v1141_v0 }
  0x60   :  { %1056 = vmatpush3.bf16.msra.mxu0 %v1128_v34 }
  0x61   :  { %1057 = vmatprep.subr.bf16.mxu0 %v1141_v0  ;;  %1076 = vmatpush3.bf16.msra.mxu1 %v1136_v42 }
  0x62   :  { %1077 = vmatprep.subr.bf16.mxu1 %v1141_v0 }
  0x64   :  { %1058 = vmatpush3.bf16.msra.mxu0 %v1129_v35 }
  0x65   :  { %1059 = vmatprep.subr.bf16.mxu0 %v1141_v0  ;;  %1078 = vmatpush3.bf16.msra.mxu1 %v1137_v43 }
  0x66   :  { %1079 = vmatprep.subr.bf16.mxu1 %v1141_v0 }
  0x68   :  { %1060 = vmatpush3.bf16.msra.mxu0 %v1130_v36  ;;  %v624_v36 = vrot.slane %v588_v29, %v623_v26 }
  0x69   :  { %1061 = vmatprep.subr.bf16.mxu0 %v1141_v0  ;;  %1080 = vmatpush3.bf16.msra.mxu1 %v1138_v44  ;;  %v637_v44 = vsub.s32 2, %v622_v20 }
  0x6a   :  { %1081 = vmatprep.subr.bf16.mxu1 %v1141_v0 }
  0x6c   :  { %1062 = vmatpush3.bf16.msra.mxu0 %v1131_v37  ;;  %v631_v37 = vsub.s32 1, %v622_v20 }
  0x6d   :  { %1063 = vmatprep.subr.bf16.mxu0 %v1141_v0 }
  0x6e   :  { %v632_v42 = vrot.slane %v588_v29, %v631_v37 }
  0x70   :  { %1064 = vmatpush3.bf16.msra.mxu0 %v1132_v38 }
  0xdd   :  { %v260_v45 = vpop.f32.mrb[0].mxu1 }
  0xde   :  { %v1023_v46 = vpop.f32.mrb[1].mxu1 }
  0xdf   :  { %v263_v47 = vpop.f32.mrb[2].mxu1 }
  0xe0   :  { %v1024_v48 = vpop.f32.mrb[3].mxu1 }
  0xf6   :  { %v915_v49 = vpop.f32.mrb[0].mxu0 }
  0xf7   :  { %v916_v50 = vpop.f32.mrb[1].mxu0 }
  0xf8   :  { %v917_v51 = vadd.f32 %v916_v50, %v915_v49  ;;  %v918_v52 = vpop.f32.mrb[2].mxu0  ;;  %v638_v49 = vrot.slane %v588_v29, %v637_v44 }
  0xf9   :  { %v919_v53 = vpop.f32.mrb[3].mxu0 }
  0xfa   :  { %v261_v54 = vadd.f32 %v917_v51, %v260_v45  ;;  %v920_v55 = vadd.f32 %v919_v53, %v918_v52 }
  0xfc   :  { %v264_v56 = vadd.f32 %v920_v55, %v263_v47  ;;  %v1140_v55 = vld [vmem:[%s1465_s3 + $0x78] sm:$0xff]  }
  0xfd   :  { %v940_v57 = vpop.f32.mrb[4].mxu1 }
  0xfe   :  { %v941_v58 = vpop.f32.mrb[5].mxu1  ;;  %v365_v59 = vpop.f32.mrb[4].mxu0 }
  0xff   :  { %v942_v60 = vadd.f32 %v941_v58, %v940_v57  ;;  %v943_v61 = vpop.f32.mrb[6].mxu1  ;;  %v1031_v62 = vpop.f32.mrb[5].mxu0 }
 0x100   :  { %v944_v63 = vpop.f32.mrb[7].mxu1  ;;  %v368_v1 = vpop.f32.mrb[6].mxu0 }
 0x101   :  { %v366_v2 = vadd.f32 %v942_v60, %v365_v59  ;;  %v945_v3 = vadd.f32 %v944_v63, %v943_v61  ;;  %v1032_v4 = vpop.f32.mrb[7].mxu0 }
 0x102   :  { %v740_v4 = vsub.s32 4, %v622_v20 }
 0x103   :  { %v582_v5 = vmax.f32 %v261_v54, %v366_v2  ;;  %v369_v6 = vadd.f32 %v945_v3, %v368_v1  ;;  %v1139_v54 = vld [vmem:[%s1465_s3 + $0x70] sm:$0xff]  }
 0x104   :  { %1082 = vmatpush3.bf16.msra.mxu1 %v1139_v54 }
 0x105   :  { %v583_v7 = vmax.f32 %v264_v56, %v369_v6  ;;  %v470_v8 = vpop.f32.mrb[8].mxu1  ;;  %1083 = vmatprep.subr.bf16.mxu1 %v1141_v0  ;;  %v644_v56 = vsub.s32 3, %v622_v20 }
 0x106   :  { %v1039_v9 = vpop.f32.mrb[9].mxu1 }
 0x107   :  { %v473_v10 = vpop.f32.mrb[10].mxu1  ;;  %v645_v57 = vrot.slane %v588_v29, %v644_v56 }
 0x108   :  { %v1040_v11 = vpop.f32.mrb[11].mxu1  ;;  %1084 = vmatpush3.bf16.msra.mxu1 %v1140_v55 }
 0x11e   :  { %v965_v12 = vpop.f32.mrb[8].mxu0 }
 0x11f   :  { %v966_v13 = vpop.f32.mrb[9].mxu0 }
 0x120   :  { %v967_v15 = vadd.f32 %v966_v13, %v965_v12  ;;  %v968_v16 = vpop.f32.mrb[10].mxu0 }
 0x121   :  { %v969_v17 = vpop.f32.mrb[11].mxu0 }
 0x122   :  { %v471_v18 = vadd.f32 %v967_v15, %v470_v8  ;;  %v970_v19 = vadd.f32 %v969_v17, %v968_v16 }
 0x124   :  { %v474_v21 = vadd.f32 %v970_v19, %v473_v10 }
 0x125   :  { %v990_v22 = vpop.f32.mrb[12].mxu1 }
 0x126   :  { %v991_v23 = vpop.f32.mrb[13].mxu1  ;;  %v575_v24 = vpop.f32.mrb[12].mxu0 }
 0x127   :  { %v992_v25 = vadd.f32 %v991_v23, %v990_v22  ;;  %v993_v27 = vpop.f32.mrb[14].mxu1  ;;  %v1047_v28 = vpop.f32.mrb[13].mxu0 }
 0x128   :  { %v994_v30 = vpop.f32.mrb[15].mxu1  ;;  %v578_v31 = vpop.f32.mrb[14].mxu0 }
 0x129   :  { %v576_v32 = vadd.f32 %v992_v25, %v575_v24  ;;  %v995_v33 = vadd.f32 %v994_v30, %v993_v27  ;;  %v1048_v34 = vpop.f32.mrb[15].mxu0 }
 0x12b   :  { %v584_v35 = vmax.f32 %v471_v18, %v576_v32  ;;  %v579_v38 = vadd.f32 %v995_v33, %v578_v31 }
 0x12d   :  { %v586_v39 = vmax.f32 %v582_v5, %v584_v35  ;;  %v585_v40 = vmax.f32 %v474_v21, %v579_v38  ;;  %v741_v5 = vrot.slane %v588_v29, %v740_v4 }
 0x12f   :  { %v625_v41 = vadd.f32 %v624_v36, %v586_v39  ;;  %v587_v43 = vmax.f32 %v583_v7, %v585_v40 }
 0x131   :  { %v627_v45 = vmax.f32 %v625_v41, 0.0  ;;  %v626_v46 = vadd.f32 %v624_v36, %v587_v43 }
 0x133   :  { %v633_v47 = vmul.f32 %v632_v42, %v627_v45  ;;  %v628_v48 = vmax.f32 %v626_v46, 0.0 }
 0x135   :  { %v634_v50 = vmul.f32 %v632_v42, %v628_v48  ;;  %v639_v51 = vadd.f32 %v638_v49, %v633_v47 }
 0x137   :  { %v640_v52 = vadd.f32 %v638_v49, %v634_v50 }
 0x139   :  { %v641_v53 = vpack.c.bf16 %v640_v52, %v639_v51 }
 0x13b   :  { %1066 = vmatmul.mubr.bf16.vlgmr.msra.gmra.mrb[16].mxu0 %v641_v53 }
 0x20e   :  { %v728_v58 = vpop.f32.mrb[16].mxu0 }
 0x20f   :  { %v729_v59 = vadd.f32 %v728_v58, %v645_v57  ;;  %v1067_v60 = vpop.f32.mrb[17].mxu0 }
 0x210   :  { %v731_v61 = vpop.f32.mrb[18].mxu0 }
 0x211   :  { %v732_v62 = vadd.f32 %v731_v61, %v645_v57  ;;  %v1068_v63 = vpop.f32.mrb[19].mxu0  ;;  %v735_v1 = vmax.f32 %v729_v59, 0.0 }
 0x213   :  { %v736_v2 = vmax.f32 %v732_v62, 0.0 }
 0x215   :  { %v737_v3 = vpack.c.bf16 %v736_v2, %v735_v1 }
 0x217   :  { %1086 = vmatmul.mubr.bf16.vlgmr.msra.gmra.mrb[16].mxu1 %v737_v3 }
 0x2ea   :  { %v824_v0 = vpop.f32.mrb[16].mxu1 }
 0x2eb   :  { %v825_v6 = vadd.f32 %v824_v0, %v741_v5  ;;  %v1087_v7 = vpop.f32.mrb[17].mxu1 }
 0x2ec   :  { %v827_v8 = vpop.f32.mrb[18].mxu1 }
 0x2ed   :  { %831 = vst [vmem:[%s1467_s4] sm:$0xff] %v825_v6  ;;  %v828_v9 = vadd.f32 %v827_v8, %v741_v5  ;;  %v1088_v10 = vpop.f32.mrb[19].mxu1 }
 0x2ef   :  { %832 = vst [vmem:[%s1467_s4 + $0x8] sm:$0xff] %v828_v9 }

</bundles_post_ra>
